<compile_context>
chip_gen: v7x
topology: tpu7x:2x2x1
jax: 0.10.0
libtpu: 0.0.40
codegen_flags: <defaults>
</compile_context>

<pallas_src>
import functools

import jax
import jax.numpy as jnp
from jax.experimental import pallas as pl
from jax.experimental.pallas import tpu as pltpu


def _round_up(x, m):
    return (x + m - 1) // m * m


def mlp_kernel(x_ref, w1_ref, b1_ref, w2_ref, b2_ref, w3_ref, b3_ref, o_ref):
    # Cast the f32 input tile to the weight compute dtype in-kernel (VPU cast;
    # avoids a separate XLA cast pass over x in HBM).
    x = x_ref[...].astype(w1_ref.dtype)
    # Layer 1: (tb, 784) @ (784, 512) -> f32 accumulation; bias + ReLU in f32.
    h1 = jnp.dot(x, w1_ref[...], preferred_element_type=jnp.float32)
    h1 = jnp.maximum(h1 + b1_ref[...], 0.0).astype(w2_ref.dtype)
    # Layer 2: (tb, 512) @ (512, 256)
    h2 = jnp.dot(h1, w2_ref[...], preferred_element_type=jnp.float32)
    h2 = jnp.maximum(h2 + b2_ref[...], 0.0).astype(w3_ref.dtype)
    # Layer 3 (logits, no activation): (tb, 256) @ (256, 64)
    y = jnp.dot(h2, w3_ref[...], preferred_element_type=jnp.float32)
    o_ref[...] = (y + b3_ref[...]).astype(o_ref.dtype)


def prepare_params(w1, b1, w2, b2, w3, b3, compute_dtype=jnp.bfloat16):
    """One-time parameter prep (outside the jitted forward): cast weights to
    the matmul compute dtype, keep biases as f32 (1, out) rows."""
    return (
        w1.astype(compute_dtype), b1.reshape(1, -1).astype(jnp.float32),
        w2.astype(compute_dtype), b2.reshape(1, -1).astype(jnp.float32),
        w3.astype(compute_dtype), b3.reshape(1, -1).astype(jnp.float32),
    )


def _choose_tb(B):
    """Batch tile: tiny batches -> one tile; otherwise at least 2 grid steps
    (v7x has 2 TensorCores) and big MXU-row-filling tiles for large batches."""
    if B <= 16:
        return B
    half = pl.cdiv(B, 2)
    if B <= 512:
        tb = _round_up(half, 8)                  # >= 2 steps, sublane-aligned
    else:
        tb = min(1024, _round_up(half, 256))     # fill 256-wide MXU rows
    return min(tb, B)


@functools.partial(jax.jit, static_argnames=("tb",))
def mlp_forward(x, params, tb=None):
    """x: (B, 784) float32; params from prepare_params(). Returns (B, 64) f32."""
    w1, b1, w2, b2, w3, b3 = params
    B, D_in = x.shape
    assert D_in == 784
    D_h1, D_h2, D_out = w1.shape[1], w2.shape[1], w3.shape[1]

    if tb is None:
        tb = _choose_tb(B)
    tb = min(tb, B)
    grid = (pl.cdiv(B, tb),)

    w_itemsize = jnp.dtype(w1.dtype).itemsize
    x_itemsize = jnp.dtype(x.dtype).itemsize

    # VMEM footprint: double-buffered x/out tiles + resident (double-buffered)
    # weights/biases + f32 intermediates; 1.5x headroom, capped well below HW.
    vmem_bytes = (
        2 * tb * D_in * x_itemsize
        + 2 * tb * D_out * 4
        + 2 * (D_in * D_h1 + D_h1 * D_h2 + D_h2 * D_out) * w_itemsize
        + 2 * (D_h1 + D_h2 + D_out) * 4
        + tb * (D_in + D_h1 + D_h2) * 4
    )
    vmem_limit = min(int(vmem_bytes * 1.5) + (2 << 20), 96 * 1024 * 1024)

    flops = 2 * B * (D_in * D_h1 + D_h1 * D_h2 + D_h2 * D_out)
    bytes_accessed = (
        B * D_in * x_itemsize                                       # x
        + (D_in * D_h1 + D_h1 * D_h2 + D_h2 * D_out) * w_itemsize   # weights
        + (D_h1 + D_h2 + D_out) * 4                                 # biases
        + B * D_out * 4                                             # output
    )

    return pl.pallas_call(
        mlp_kernel,
        out_shape=jax.ShapeDtypeStruct((B, D_out), jnp.float32),
        grid_spec=pltpu.PrefetchScalarGridSpec(
            num_scalar_prefetch=0,
            grid=grid,
            in_specs=[
                pl.BlockSpec((tb, D_in), lambda i: (i, 0)),     # x tile
                pl.BlockSpec((D_in, D_h1), lambda i: (0, 0)),   # W1 (VMEM-resident)
                pl.BlockSpec((1, D_h1), lambda i: (0, 0)),      # b1
                pl.BlockSpec((D_h1, D_h2), lambda i: (0, 0)),   # W2
                pl.BlockSpec((1, D_h2), lambda i: (0, 0)),      # b2
                pl.BlockSpec((D_h2, D_out), lambda i: (0, 0)),  # W3
                pl.BlockSpec((1, D_out), lambda i: (0, 0)),     # b3
            ],
            out_specs=pl.BlockSpec((tb, D_out), lambda i: (i, 0)),
        ),
        compiler_params=pltpu.CompilerParams(
            dimension_semantics=("parallel",),
            vmem_limit_bytes=vmem_limit,
        ),
        cost_estimate=pl.CostEstimate(
            flops=flops, transcendentals=0, bytes_accessed=bytes_accessed
        ),
    )(x, w1, b1, w2, b2, w3, b3)


def init_linear_params(key, fan_in, fan_out, dtype=jnp.float32):
    """torch.nn.Linear default init: U[-1/sqrt(fan_in), 1/sqrt(fan_in)].
    Weights stored as (in, out) so the kernel computes x @ W + b."""
    kw, kb = jax.random.split(key)
    bound = 1.0 / (fan_in ** 0.5)
    w = jax.random.uniform(kw, (fan_in, fan_out), dtype, minval=-bound, maxval=bound)
    b = jax.random.uniform(kb, (fan_out,), dtype, minval=-bound, maxval=bound)
    return w, b


def reference_forward(x, w1, b1, w2, b2, w3, b3):
    h = jnp.maximum(x @ w1 + b1, 0.0)
    h = jnp.maximum(h @ w2 + b2, 0.0)
    return h @ w3 + b3


if __name__ == "__main__":
    key = jax.random.PRNGKey(0)
    k_x, k1, k2, k3 = jax.random.split(key, 4)

    # Feature dims are fixed by the module: 784 -> 512 -> 256 -> 64.
    w1, b1 = init_linear_params(k1, 784, 512)
    w2, b2 = init_linear_params(k2, 512, 256)
    w3, b3 = init_linear_params(k3, 256, 64)

    params_f32 = prepare_params(w1, b1, w2, b2, w3, b3, compute_dtype=jnp.float32)
    params_bf16 = prepare_params(w1, b1, w2, b2, w3, b3, compute_dtype=jnp.bfloat16)

    # Case 1: small batch, single grid step, f32 weights (tighter check).
    x8 = jax.random.normal(k_x, (8, 784), dtype=jnp.float32)
    y_ref8 = reference_forward(x8, w1, b1, w2, b2, w3, b3)
    y8 = jax.block_until_ready(mlp_forward(x8, params_f32))
    assert y8.shape == (8, 64)
    assert jnp.allclose(y8, y_ref8, atol=5e-2, rtol=5e-2), "f32 path mismatch"

    # Case 2: batch not divisible by the tile (exercises Pallas partial
    # blocks) with bf16 weights / f32 accumulation (default perf config).
    x20 = jax.random.normal(jax.random.fold_in(k_x, 1), (20, 784), dtype=jnp.float32)
    y_ref20 = reference_forward(x20, w1, b1, w2, b2, w3, b3)
    y20 = jax.block_until_ready(mlp_forward(x20, params_bf16, tb=16))
    assert y20.shape == (20, 64)
    assert jnp.allclose(y20, y_ref20, atol=1e-1, rtol=1e-1), "bf16 path mismatch"

    print("KERNEL_OK")
</pallas_src>

<mosaic_0001>
module attributes {stable_mosaic.version = 11 : i64} {
  func.func @mlp_kernel(%arg0: i32, %arg1: memref<8x784xf32, #tpu.memory_space<vmem>>, %arg2: memref<784x512xf32, #tpu.memory_space<vmem>>, %arg3: memref<1x512xf32, #tpu.memory_space<vmem>>, %arg4: memref<512x256xf32, #tpu.memory_space<vmem>>, %arg5: memref<1x256xf32, #tpu.memory_space<vmem>>, %arg6: memref<256x64xf32, #tpu.memory_space<vmem>>, %arg7: memref<1x64xf32, #tpu.memory_space<vmem>>, %arg8: memref<8x64xf32, #tpu.memory_space<vmem>>) attributes {dimension_semantics = [#tpu.dimension_semantics<parallel>], iteration_bounds = array<i64: 1>, scalar_prefetch = 0 : i64, scratch_operands = 0 : i64, tpu.core_type = #tpu.core_type<tc>, window_params = [{transform_indices = @transform_0, window_bounds = array<i64: 8, 784>}, {pipeline_mode = #tpu.pipeline_mode<synchronous>, transform_indices = @transform_1, window_bounds = array<i64: 784, 512>}, {pipeline_mode = #tpu.pipeline_mode<synchronous>, transform_indices = @transform_2, window_bounds = array<i64: 1, 512>}, {pipeline_mode = #tpu.pipeline_mode<synchronous>, transform_indices = @transform_3, window_bounds = array<i64: 512, 256>}, {pipeline_mode = #tpu.pipeline_mode<synchronous>, transform_indices = @transform_4, window_bounds = array<i64: 1, 256>}, {pipeline_mode = #tpu.pipeline_mode<synchronous>, transform_indices = @transform_5, window_bounds = array<i64: 256, 64>}, {pipeline_mode = #tpu.pipeline_mode<synchronous>, transform_indices = @transform_6, window_bounds = array<i64: 1, 64>}, {transform_indices = @transform_7, window_bounds = array<i64: 8, 64>}]} {
    %c0 = arith.constant 0 : index
    %c0_0 = arith.constant 0 : index
    %0 = vector.load %arg1[%c0, %c0_0] : memref<8x784xf32, #tpu.memory_space<vmem>>, vector<8x784xf32>
    %c0_1 = arith.constant 0 : index
    %c0_2 = arith.constant 0 : index
    %1 = vector.load %arg2[%c0_1, %c0_2] : memref<784x512xf32, #tpu.memory_space<vmem>>, vector<784x512xf32>
    %cst = arith.constant dense<0.000000e+00> : vector<8x512xf32>
    %2 = tpu.matmul %0, %1, %cst {dimension_numbers = #tpu.dot_dimension_numbers<[1], [0], [0], [1], [0, 0, 1, 1], [], []>} : vector<8x784xf32>, vector<784x512xf32>, vector<8x512xf32> -> vector<8x512xf32>
    %c0_3 = arith.constant 0 : index
    %c0_4 = arith.constant 0 : index
    %3 = vector.load %arg3[%c0_3, %c0_4] : memref<1x512xf32, #tpu.memory_space<vmem>>, vector<1x512xf32>
    %4 = vector.broadcast %3 : vector<1x512xf32> to vector<8x512xf32>
    %5 = arith.addf %2, %4 : vector<8x512xf32>
    %cst_5 = arith.constant 0.000000e+00 : f32
    %6 = vector.broadcast %cst_5 : f32 to vector<8x512xf32>
    %7 = arith.maximumf %5, %6 : vector<8x512xf32>
    %c0_6 = arith.constant 0 : index
    %c0_7 = arith.constant 0 : index
    %8 = vector.load %arg4[%c0_6, %c0_7] : memref<512x256xf32, #tpu.memory_space<vmem>>, vector<512x256xf32>
    %cst_8 = arith.constant dense<0.000000e+00> : vector<8x256xf32>
    %9 = tpu.matmul %7, %8, %cst_8 {dimension_numbers = #tpu.dot_dimension_numbers<[1], [0], [0], [1], [0, 0, 1, 1], [], []>} : vector<8x512xf32>, vector<512x256xf32>, vector<8x256xf32> -> vector<8x256xf32>
    %c0_9 = arith.constant 0 : index
    %c0_10 = arith.constant 0 : index
    %10 = vector.load %arg5[%c0_9, %c0_10] : memref<1x256xf32, #tpu.memory_space<vmem>>, vector<1x256xf32>
    %11 = vector.broadcast %10 : vector<1x256xf32> to vector<8x256xf32>
    %12 = arith.addf %9, %11 : vector<8x256xf32>
    %cst_11 = arith.constant 0.000000e+00 : f32
    %13 = vector.broadcast %cst_11 : f32 to vector<8x256xf32>
    %14 = arith.maximumf %12, %13 : vector<8x256xf32>
    %c0_12 = arith.constant 0 : index
    %c0_13 = arith.constant 0 : index
    %15 = vector.load %arg6[%c0_12, %c0_13] : memref<256x64xf32, #tpu.memory_space<vmem>>, vector<256x64xf32>
    %cst_14 = arith.constant dense<0.000000e+00> : vector<8x64xf32>
    %16 = tpu.matmul %14, %15, %cst_14 {dimension_numbers = #tpu.dot_dimension_numbers<[1], [0], [0], [1], [0, 0, 1, 1], [], []>} : vector<8x256xf32>, vector<256x64xf32>, vector<8x64xf32> -> vector<8x64xf32>
    %c0_15 = arith.constant 0 : index
    %c0_16 = arith.constant 0 : index
    %17 = vector.load %arg7[%c0_15, %c0_16] : memref<1x64xf32, #tpu.memory_space<vmem>>, vector<1x64xf32>
    %18 = vector.broadcast %17 : vector<1x64xf32> to vector<8x64xf32>
    %19 = arith.addf %16, %18 : vector<8x64xf32>
    %c0_17 = arith.constant 0 : index
    %c0_18 = arith.constant 0 : index
    %20 = vector.load %arg8[%c0_17, %c0_18] : memref<8x64xf32, #tpu.memory_space<vmem>>, vector<8x64xf32>
    tpu.vector_store %arg8[%c0_17, %c0_18], %19 {strides = array<i32>} : memref<8x64xf32, #tpu.memory_space<vmem>>, vector<8x64xf32>,
    return
  }
  func.func @transform_0(%arg0: i32) -> (i32, i32) {
    %c0_i32 = arith.constant 0 : i32
    %c0_i32_0 = arith.constant 0 : i32
    return %arg0, %c0_i32 : i32, i32
  }
  func.func @transform_1(%arg0: i32) -> (i32, i32) {
    %c0_i32 = arith.constant 0 : i32
    %c0_i32_0 = arith.constant 0 : i32
    %c0_i32_1 = arith.constant 0 : i32
    return %c0_i32, %c0_i32_0 : i32, i32
  }
  func.func @transform_2(%arg0: i32) -> (i32, i32) {
    %c0_i32 = arith.constant 0 : i32
    %c0_i32_0 = arith.constant 0 : i32
    %c0_i32_1 = arith.constant 0 : i32
    return %c0_i32, %c0_i32_0 : i32, i32
  }
  func.func @transform_3(%arg0: i32) -> (i32, i32) {
    %c0_i32 = arith.constant 0 : i32
    %c0_i32_0 = arith.constant 0 : i32
    %c0_i32_1 = arith.constant 0 : i32
    return %c0_i32, %c0_i32_0 : i32, i32
  }
  func.func @transform_4(%arg0: i32) -> (i32, i32) {
    %c0_i32 = arith.constant 0 : i32
    %c0_i32_0 = arith.constant 0 : i32
    %c0_i32_1 = arith.constant 0 : i32
    return %c0_i32, %c0_i32_0 : i32, i32
  }
  func.func @transform_5(%arg0: i32) -> (i32, i32) {
    %c0_i32 = arith.constant 0 : i32
    %c0_i32_0 = arith.constant 0 : i32
    %c0_i32_1 = arith.constant 0 : i32
    return %c0_i32, %c0_i32_0 : i32, i32
  }
  func.func @transform_6(%arg0: i32) -> (i32, i32) {
    %c0_i32 = arith.constant 0 : i32
    %c0_i32_0 = arith.constant 0 : i32
    %c0_i32_1 = arith.constant 0 : i32
    return %c0_i32, %c0_i32_0 : i32, i32
  }
  func.func @transform_7(%arg0: i32) -> (i32, i32) {
    %c0_i32 = arith.constant 0 : i32
    %c0_i32_0 = arith.constant 0 : i32
    return %arg0, %c0_i32 : i32, i32
  }
}

</mosaic_0001>

<bundles_post_ra>
// kernel: mlp_forward.1
= control target key start
LH: loop header
LB: loop body
LE: loop exit
PB: predicated region body
PF: predicated region fallthrough
CT: control target
= control target key end

     0   :  { %12 = vsyncpa [#allocation3], 0  ;;  %s2581_s0 = inlined_call_operand.hbm [shape: f32[8,784], index: 0, kind: input, shape index: {}]   ;;  %s2582_s1 = inlined_call_operand.hbm [shape: f32[784,512], index: 1, kind: input, shape index: {}]   ;;  %s2583_s2 = inlined_call_operand.hbm [shape: f32[1,512], index: 2, kind: input, shape index: {}]   ;;  %s2584_s3 = inlined_call_operand.hbm [shape: f32[512,256], index: 3, kind: input, shape index: {}]   ;;  %s2585_s4 = inlined_call_operand.hbm [shape: f32[1,256], index: 4, kind: input, shape index: {}]   ;;  %s2586_s5 = inlined_call_operand.vmem [shape: f32[256,64], index: 5, kind: input, shape index: {}]   ;;  %s2587_s6 = inlined_call_operand.hbm [shape: f32[1,64], index: 6, kind: input, shape index: {}]   ;;  %s2588_s7 = inlined_call_operand.hbm [shape: f32[8,64], index: 7, kind: output, shape index: {}]  }
   0x1   :  { %13 = vsyncpa [#allocation6], 0 }
   0x2   :  { %14 = vsyncpa [#allocation9], 0 }
   0x3   :  { %15 = vsyncpa [#allocation12], 0 }
   0x4   :  { %16 = vsyncpa [#allocation4], 0  ;;  %s2297_s24 = smov [#allocation5]   ;;  %s2133_s28 = scalar_lea.hbm %s2582_s1, 50176 }
   0x5   :  { %s32_s25 = sshll.u32 %s2297_s24, 4  ;;  %p2134_p0 = scmp.ne.s32.totalorder %s2582_s1, %s2133_s28  ;;  %s33_s25 = int_to_ptr.vmem [resolvable:$true] %s32_s25 }
   0x6   :  { %p2137_p1 = scmp.lt.u32.totalorder %s2133_s28, %s2582_s1 }
   0x8   :  { %p2139_p2 = pnand %p2137_p1, %p2134_p0 }
   0xa   :  { %2142 = shalt.err (!%p2139_p2)
}
   0xb   :  { %s2143_s10 = scalar_lea.vmem %s33_s25, 50176  ;;  %p2148_p4 = scmp.lt.s32.totalorder %s33_s25, %s33_s25 }
   0xc   :  { %p2144_p3 = scmp.ne.s32.totalorder %s33_s25, %s2143_s10  ;;  %p2149_p5 = scmp.lt.s32.totalorder %s2143_s10, %s2143_s10 }
   0xe   :  { %p2150_p6 = por %p2149_p5, %p2148_p4 }
  0x10   :  { %p2151_p7 = pnand %p2150_p6, %p2144_p3 }
  0x12   :  { %2154 = shalt.err (!%p2151_p7)
}
  0x13   :  { %s2298_s11 = smov 512   ;;  %s2299_s12 = smov 32  }
  0x14   :  { %38 = dma.hbm_to_vmem [thread:$0]  %s2582_s1, 50176, %s33_s25, [#allocation6], %s2298_s11, %s2298_s11, %s2299_s12  }
  0x15   :  { %s2300_s15 = smov [#allocation8]   ;;  %s2155_s19 = scalar_lea.hbm %s2584_s3, 16384 }
  0x16   :  { %s54_s16 = sshll.u32 %s2300_s15, 4  ;;  %p2156_p8 = scmp.ne.s32.totalorder %s2584_s3, %s2155_s19  ;;  %s55_s16 = int_to_ptr.vmem [resolvable:$true] %s54_s16 }
  0x17   :  { %p2159_p9 = scmp.lt.u32.totalorder %s2155_s19, %s2584_s3 }
  0x19   :  { %p2161_p10 = pnand %p2159_p9, %p2156_p8 }
  0x1b   :  { %2164 = shalt.err (!%p2161_p10)
}
  0x1c   :  { %s2165_s24 = scalar_lea.vmem %s55_s16, 16384  ;;  %p2170_p12 = scmp.lt.s32.totalorder %s55_s16, %s55_s16 }
  0x1d   :  { %p2166_p11 = scmp.ne.s32.totalorder %s55_s16, %s2165_s24  ;;  %p2171_p13 = scmp.lt.s32.totalorder %s2165_s24, %s2165_s24 }
  0x1f   :  { %p2172_p0 = por %p2171_p13, %p2170_p12 }
  0x21   :  { %p2173_p1 = pnand %p2172_p0, %p2166_p11 }
  0x23   :  { %2176 = shalt.err (!%p2173_p1)
}
  0x24   :  { %s2301_s1 = smov 256   ;;  %s2302_s25 = smov 16  }
  0x25   :  { %60 = dma.hbm_to_vmem [thread:$0]  %s2584_s3, 16384, %s55_s16, [#allocation9], %s2301_s1, %s2301_s1, %s2302_s25  }
  0x26   :  { %s2303_s28 = smov [#allocation2]   ;;  %s2304_s30 = smov [#allocation7]  }
  0x27   :  { %s23_s29 = sshll.u32 %s2303_s28, 4  ;;  %s45_s8 = sshll.u32 %s2304_s30, 4  ;;  %s24_s29 = int_to_ptr.vmem [resolvable:$true] %s23_s29  ;;  %s46_s8 = int_to_ptr.vmem [resolvable:$true] %s45_s8 }
  0x28   :  { %s2177_s11 = scalar_lea.hbm %s2581_s0, 896 }
  0x29   :  { %p2178_p2 = scmp.ne.s32.totalorder %s2581_s0, %s2177_s11  ;;  %p2181_p3 = scmp.lt.u32.totalorder %s2177_s11, %s2581_s0 }
  0x2b   :  { %p2183_p4 = pnand %p2181_p3, %p2178_p2 }
  0x2d   :  { %2186 = shalt.err (!%p2183_p4)
}
  0x2e   :  { %s2187_s3 = scalar_lea.vmem %s24_s29, 896  ;;  %p2192_p6 = scmp.lt.s32.totalorder %s24_s29, %s24_s29 }
  0x2f   :  { %p2188_p5 = scmp.ne.s32.totalorder %s24_s29, %s2187_s3  ;;  %p2193_p7 = scmp.lt.s32.totalorder %s2187_s3, %s2187_s3 }
  0x31   :  { %p2194_p8 = por %p2193_p7, %p2192_p6 }
  0x33   :  { %p2195_p9 = pnand %p2194_p8, %p2188_p5 }
  0x35   :  { %2198 = shalt.err (!%p2195_p9)
}
  0x36   :  { %26 = dma.hbm_to_vmem [thread:$0]  %s2581_s0, 896, %s24_s29, [#allocation3]  }
  0x37   :  { %s2199_s20 = scalar_lea.hbm %s2583_s2, 64 }
  0x38   :  { %p2200_p10 = scmp.ne.s32.totalorder %s2583_s2, %s2199_s20  ;;  %p2203_p11 = scmp.lt.u32.totalorder %s2199_s20, %s2583_s2 }
  0x3a   :  { %p2205_p12 = pnand %p2203_p11, %p2200_p10 }
  0x3c   :  { %2208 = shalt.err (!%p2205_p12)
}
  0x3d   :  { %s2209_s1 = scalar_lea.vmem %s46_s8, 64  ;;  %p2214_p0 = scmp.lt.s32.totalorder %s46_s8, %s46_s8 }
  0x3e   :  { %p2210_p13 = scmp.ne.s32.totalorder %s46_s8, %s2209_s1  ;;  %p2215_p1 = scmp.lt.s32.totalorder %s2209_s1, %s2209_s1 }
  0x40   :  { %p2216_p2 = por %p2215_p1, %p2214_p0 }
  0x42   :  { %p2217_p3 = pnand %p2216_p2, %p2210_p13 }
  0x44   :  { %2220 = shalt.err (!%p2217_p3)
}
  0x45   :  { %48 = dma.hbm_to_vmem [thread:$0]  %s2583_s2, 64, %s46_s8, [#allocation6]  }
  0x46   :  { %s2305_s26 = smov [#allocation10]   ;;  %s2306_s28 = smov [#allocation11]  }
  0x47   :  { %s67_s27 = sshll.u32 %s2305_s26, 4  ;;  %s79_s29 = sshll.u32 %s2306_s28, 4  ;;  %s68_s27 = int_to_ptr.vmem [resolvable:$true] %s67_s27  ;;  %s80_s29 = int_to_ptr.vmem [resolvable:$true] %s79_s29 }
  0x48   :  { %s2221_s10 = scalar_lea.hbm %s2585_s4, 32 }
  0x49   :  { %p2222_p4 = scmp.ne.s32.totalorder %s2585_s4, %s2221_s10  ;;  %p2225_p5 = scmp.lt.u32.totalorder %s2221_s10, %s2585_s4 }
  0x4b   :  { %p2227_p6 = pnand %p2225_p5, %p2222_p4 }
  0x4d   :  { %2230 = shalt.err (!%p2227_p6)
}
  0x4e   :  { %s2231_s2 = scalar_lea.vmem %s68_s27, 32  ;;  %p2236_p8 = scmp.lt.s32.totalorder %s68_s27, %s68_s27 }
  0x4f   :  { %p2232_p7 = scmp.ne.s32.totalorder %s68_s27, %s2231_s2  ;;  %p2237_p9 = scmp.lt.s32.totalorder %s2231_s2, %s2231_s2 }
  0x51   :  { %p2238_p10 = por %p2237_p9, %p2236_p8 }
  0x53   :  { %p2239_p11 = pnand %p2238_p10, %p2232_p7 }
  0x55   :  { %2242 = shalt.err (!%p2239_p11)
}
  0x56   :  { %70 = dma.hbm_to_vmem [thread:$0]  %s2585_s4, 32, %s68_s27, [#allocation9]  }
  0x57   :  { %s2243_s17 = scalar_lea.hbm %s2587_s6, 16 }
  0x58   :  { %p2244_p12 = scmp.ne.s32.totalorder %s2587_s6, %s2243_s17  ;;  %p2247_p13 = scmp.lt.u32.totalorder %s2243_s17, %s2587_s6 }
  0x5a   :  { %p2249_p0 = pnand %p2247_p13, %p2244_p12 }
  0x5c   :  { %2252 = shalt.err (!%p2249_p0)
}
  0x5d   :  { %s2253_s22 = scalar_lea.vmem %s80_s29, 16  ;;  %s2257_s23 = scalar_lea.vmem %s80_s29, 32 }
  0x5e   :  { %p2254_p1 = scmp.ne.s32.totalorder %s80_s29, %s2253_s22  ;;  %p2258_p2 = scmp.lt.s32.totalorder %s80_s29, %s80_s29 }
  0x5f   :  { %p2259_p3 = scmp.lt.s32.totalorder %s2257_s23, %s2253_s22 }
  0x61   :  { %p2260_p4 = por %p2259_p3, %p2258_p2 }
  0x63   :  { %p2261_p5 = pnand %p2260_p4, %p2254_p1 }
  0x65   :  { %2264 = shalt.err (!%p2261_p5)
}
  0x66   :  { %82 = dma.hbm_to_vmem [thread:$0]  %s2587_s6, 16, %s80_s29, [#allocation12]  }
  0x67   :  { %2287 = dma.done.wait [#allocation3], 896  }
  0x68   :  { %2288 = vsyncadd [#allocation3], 4294966400 }
  0x69   :  { %2289 = dma.done.wait [#allocation6], 50240  }
  0x6a   :  { %2290 = vsyncadd [#allocation6], 4294917056 }
  0x6b   :  { %2291 = dma.done.wait [#allocation9], 16416  }
  0x6c   :  { %2292 = vsyncadd [#allocation9], 4294950880 }
  0x6d   :  { %2293 = dma.done.wait [#allocation12], 16  }
  0x6e   :  { %2294 = vsyncadd [#allocation12], 4294967280  ;;  %v109_v0 = vld [vmem:[#allocation5 + $0x8] sm:$0xff]  ;;  %v108_v5 = vld [vmem:[#allocation5] sm:$0xff]  ;;  %vm522_vm0 = vcmask 130048   ;;  %vm1491_vm1 = vcmask 523264  }
  0x6f   :  { %v113_v1 = vld [vmem:[#allocation5 + $0x28] sm:$0xff]  ;;  %v112_v6 = vld [vmem:[#allocation5 + $0x20] sm:$0xff] }
  0x70   :  { %v237_v2 = vld [vmem:[#allocation5 + $0x408] sm:$0xff]  ;;  %v1549_v3 = vpack.c.bf16 %v113_v1, %v109_v0  ;;  %v1551_v8 = vpack.c.bf16 %v112_v6, %v108_v5  ;;  %v236_v9 = vld [vmem:[#allocation5 + $0x400] sm:$0xff] }
  0x71   :  { %v241_v4 = vld [vmem:[#allocation5 + $0x428] sm:$0xff]  ;;  %v240_v10 = vld [vmem:[#allocation5 + $0x420] sm:$0xff] }
  0x72   :  { %v1613_v7 = vpack.c.bf16 %v241_v4, %v237_v2  ;;  %v117_v11 = vld [vmem:[#allocation5 + $0x48] sm:$0xff]  ;;  %1550 = vmatprep.subr.bf16.mxu1 %v1549_v3  ;;  %v1615_v12 = vpack.c.bf16 %v240_v10, %v236_v9  ;;  %v116_v18 = vld [vmem:[#allocation5 + $0x40] sm:$0xff] }
  0x73   :  { %v121_v13 = vld [vmem:[#allocation5 + $0x68] sm:$0xff]  ;;  %1552 = vmatpush1.bf16.msra.mxu1 %v1551_v8  ;;  %v120_v19 = vld [vmem:[#allocation5 + $0x60] sm:$0xff] }
  0x74   :  { %v245_v14 = vld [vmem:[#allocation5 + $0x448] sm:$0xff]  ;;  %1614 = vmatprep.subr.bf16.mxu0 %v1613_v7  ;;  %v1553_v16 = vpack.c.bf16 %v121_v13, %v117_v11  ;;  %v244_v20 = vld [vmem:[#allocation5 + $0x440] sm:$0xff]  ;;  %v1555_v21 = vpack.c.bf16 %v120_v19, %v116_v18 }
  0x75   :  { %v249_v15 = vld [vmem:[#allocation5 + $0x468] sm:$0xff]  ;;  %1616 = vmatpush1.bf16.msra.mxu0 %v1615_v12  ;;  %v248_v22 = vld [vmem:[#allocation5 + $0x460] sm:$0xff] }
  0x76   :  { %v1617_v17 = vpack.c.bf16 %v249_v15, %v245_v14  ;;  %v125_v23 = vld [vmem:[#allocation5 + $0x88] sm:$0xff]  ;;  %1554 = vmatprep.subr.bf16.mxu1 %v1553_v16  ;;  %v1619_v25 = vpack.c.bf16 %v248_v22, %v244_v20  ;;  %v124_v29 = vld [vmem:[#allocation5 + $0x80] sm:$0xff] }
  0x77   :  { %v129_v24 = vld [vmem:[#allocation5 + $0xa8] sm:$0xff]  ;;  %v128_v31 = vld [vmem:[#allocation5 + $0xa0] sm:$0xff]  ;;  %1556 = vmatpush1.bf16.msra.mxu1 %v1555_v21 }
  0x78   :  { %1618 = vmatprep.subr.bf16.mxu0 %v1617_v17  ;;  %v1557_v26 = vpack.c.bf16 %v129_v24, %v125_v23  ;;  %v253_v27 = vld [vmem:[#allocation5 + $0x488] sm:$0xff]  ;;  %v252_v32 = vld [vmem:[#allocation5 + $0x480] sm:$0xff]  ;;  %v1559_v34 = vpack.c.bf16 %v128_v31, %v124_v29 }
  0x79   :  { %v257_v28 = vld [vmem:[#allocation5 + $0x4a8] sm:$0xff]  ;;  %v256_v33 = vld [vmem:[#allocation5 + $0x4a0] sm:$0xff]  ;;  %1620 = vmatpush1.bf16.msra.mxu0 %v1619_v25 }
  0x7a   :  { %v1621_v30 = vpack.c.bf16 %v257_v28, %v253_v27  ;;  %v133_v35 = vld [vmem:[#allocation5 + $0xc8] sm:$0xff]  ;;  %1558 = vmatprep.subr.bf16.mxu1 %v1557_v26  ;;  %v1623_v38 = vpack.c.bf16 %v256_v33, %v252_v32  ;;  %v132_v41 = vld [vmem:[#allocation5 + $0xc0] sm:$0xff] }
  0x7b   :  { %v137_v36 = vld [vmem:[#allocation5 + $0xe8] sm:$0xff]  ;;  %v136_v42 = vld [vmem:[#allocation5 + $0xe0] sm:$0xff]  ;;  %1560 = vmatpush1.bf16.msra.mxu1 %v1559_v34 }
  0x7c   :  { %v261_v37 = vld [vmem:[#allocation5 + $0x4c8] sm:$0xff]  ;;  %v1561_v39 = vpack.c.bf16 %v137_v36, %v133_v35  ;;  %1622 = vmatprep.subr.bf16.mxu0 %v1621_v30  ;;  %v260_v44 = vld [vmem:[#allocation5 + $0x4c0] sm:$0xff]  ;;  %v1563_v50 = vpack.c.bf16 %v136_v42, %v132_v41 }
  0x7d   :  { %v265_v40 = vld [vmem:[#allocation5 + $0x4e8] sm:$0xff]  ;;  %v264_v45 = vld [vmem:[#allocation5 + $0x4e0] sm:$0xff]  ;;  %1624 = vmatpush1.bf16.msra.mxu0 %v1623_v38 }
  0x7e   :  { %v1625_v43 = vpack.c.bf16 %v265_v40, %v261_v37  ;;  %v141_v46 = vld [vmem:[#allocation5 + $0x108] sm:$0xff]  ;;  %1562 = vmatprep.subr.bf16.mxu1 %v1561_v39  ;;  %v1627_v51 = vpack.c.bf16 %v264_v45, %v260_v44  ;;  %v140_v53 = vld [vmem:[#allocation5 + $0x100] sm:$0xff] }
  0x7f   :  { %v145_v47 = vld [vmem:[#allocation5 + $0x128] sm:$0xff]  ;;  %v144_v54 = vld [vmem:[#allocation5 + $0x120] sm:$0xff]  ;;  %1564 = vmatpush1.bf16.msra.mxu1 %v1563_v50 }
  0x80   :  { %v269_v48 = vld [vmem:[#allocation5 + $0x508] sm:$0xff]  ;;  %v1565_v52 = vpack.c.bf16 %v145_v47, %v141_v46  ;;  %v268_v55 = vld [vmem:[#allocation5 + $0x500] sm:$0xff]  ;;  %1626 = vmatprep.subr.bf16.mxu0 %v1625_v43  ;;  %v1567_v62 = vpack.c.bf16 %v144_v54, %v140_v53 }
  0x81   :  { %v273_v49 = vld [vmem:[#allocation5 + $0x528] sm:$0xff]  ;;  %v272_v57 = vld [vmem:[#allocation5 + $0x520] sm:$0xff]  ;;  %1628 = vmatpush1.bf16.msra.mxu0 %v1627_v51 }
  0x82   :  { %v1629_v56 = vpack.c.bf16 %v273_v49, %v269_v48  ;;  %v149_v58 = vld [vmem:[#allocation5 + $0x148] sm:$0xff]  ;;  %1566 = vmatprep.subr.bf16.mxu1 %v1565_v52  ;;  %v1631_v63 = vpack.c.bf16 %v272_v57, %v268_v55  ;;  %v148_v1 = vld [vmem:[#allocation5 + $0x140] sm:$0xff] }
  0x83   :  { %v153_v59 = vld [vmem:[#allocation5 + $0x168] sm:$0xff]  ;;  %v152_v2 = vld [vmem:[#allocation5 + $0x160] sm:$0xff]  ;;  %1568 = vmatpush1.bf16.msra.mxu1 %v1567_v62 }
  0x84   :  { %v277_v60 = vld [vmem:[#allocation5 + $0x548] sm:$0xff]  ;;  %v1569_v0 = vpack.c.bf16 %v153_v59, %v149_v58  ;;  %v276_v3 = vld [vmem:[#allocation5 + $0x540] sm:$0xff]  ;;  %1630 = vmatprep.subr.bf16.mxu0 %v1629_v56  ;;  %v1571_v10 = vpack.c.bf16 %v152_v2, %v148_v1 }
  0x85   :  { %v281_v61 = vld [vmem:[#allocation5 + $0x568] sm:$0xff]  ;;  %v280_v5 = vld [vmem:[#allocation5 + $0x560] sm:$0xff]  ;;  %1632 = vmatpush1.bf16.msra.mxu0 %v1631_v63 }
  0x86   :  { %v1633_v4 = vpack.c.bf16 %v281_v61, %v277_v60  ;;  %v157_v6 = vld [vmem:[#allocation5 + $0x188] sm:$0xff]  ;;  %1570 = vmatprep.subr.bf16.mxu1 %v1569_v0  ;;  %v1635_v11 = vpack.c.bf16 %v280_v5, %v276_v3  ;;  %v156_v13 = vld [vmem:[#allocation5 + $0x180] sm:$0xff] }
  0x87   :  { %v161_v7 = vld [vmem:[#allocation5 + $0x1a8] sm:$0xff]  ;;  %v160_v14 = vld [vmem:[#allocation5 + $0x1a0] sm:$0xff]  ;;  %1572 = vmatpush1.bf16.msra.mxu1 %v1571_v10 }
  0x88   :  { %v285_v8 = vld [vmem:[#allocation5 + $0x588] sm:$0xff]  ;;  %v1573_v12 = vpack.c.bf16 %v161_v7, %v157_v6  ;;  %v284_v15 = vld [vmem:[#allocation5 + $0x580] sm:$0xff]  ;;  %1634 = vmatprep.subr.bf16.mxu0 %v1633_v4  ;;  %v1575_v22 = vpack.c.bf16 %v160_v14, %v156_v13 }
  0x89   :  { %v289_v9 = vld [vmem:[#allocation5 + $0x5a8] sm:$0xff]  ;;  %v288_v17 = vld [vmem:[#allocation5 + $0x5a0] sm:$0xff]  ;;  %1636 = vmatpush1.bf16.msra.mxu0 %v1635_v11 }
  0x8a   :  { %v1637_v16 = vpack.c.bf16 %v289_v9, %v285_v8  ;;  %v165_v18 = vld [vmem:[#allocation5 + $0x1c8] sm:$0xff]  ;;  %1574 = vmatprep.subr.bf16.mxu1 %v1573_v12  ;;  %v1639_v23 = vpack.c.bf16 %v288_v17, %v284_v15  ;;  %v164_v25 = vld [vmem:[#allocation5 + $0x1c0] sm:$0xff] }
  0x8b   :  { %v169_v19 = vld [vmem:[#allocation5 + $0x1e8] sm:$0xff]  ;;  %v168_v26 = vld [vmem:[#allocation5 + $0x1e0] sm:$0xff]  ;;  %1576 = vmatpush1.bf16.msra.mxu1 %v1575_v22 }
  0x8c   :  { %v293_v20 = vld [vmem:[#allocation5 + $0x5c8] sm:$0xff]  ;;  %v1577_v24 = vpack.c.bf16 %v169_v19, %v165_v18  ;;  %v292_v27 = vld [vmem:[#allocation5 + $0x5c0] sm:$0xff]  ;;  %1638 = vmatprep.subr.bf16.mxu0 %v1637_v16  ;;  %v1579_v34 = vpack.c.bf16 %v168_v26, %v164_v25  ;;  %v2421_v16 = vld [vmem:[#allocation2 + $0x8] sm:$0xff] }
  0x8d   :  { %v297_v21 = vld [vmem:[#allocation5 + $0x5e8] sm:$0xff]  ;;  %v296_v29 = vld [vmem:[#allocation5 + $0x5e0] sm:$0xff]  ;;  %1640 = vmatpush1.bf16.msra.mxu0 %v1639_v23  ;;  %590 = vmatprep.mubr.f32.mxu1 %v2421_v16 }
  0x8e   :  { %v1641_v28 = vpack.c.bf16 %v297_v21, %v293_v20  ;;  %v173_v30 = vld [vmem:[#allocation5 + $0x208] sm:$0xff]  ;;  %1578 = vmatprep.subr.bf16.mxu1 %v1577_v24  ;;  %v1643_v35 = vpack.c.bf16 %v296_v29, %v292_v27  ;;  %v172_v37 = vld [vmem:[#allocation5 + $0x200] sm:$0xff] }
  0x8f   :  { %v177_v31 = vld [vmem:[#allocation5 + $0x228] sm:$0xff]  ;;  %v176_v38 = vld [vmem:[#allocation5 + $0x220] sm:$0xff]  ;;  %1580 = vmatpush1.bf16.msra.mxu1 %v1579_v34 }
  0x90   :  { %v301_v32 = vld [vmem:[#allocation5 + $0x608] sm:$0xff]  ;;  %v1581_v36 = vpack.c.bf16 %v177_v31, %v173_v30  ;;  %v300_v39 = vld [vmem:[#allocation5 + $0x600] sm:$0xff]  ;;  %1642 = vmatprep.subr.bf16.mxu0 %v1641_v28  ;;  %v1583_v46 = vpack.c.bf16 %v176_v38, %v172_v37 }
  0x91   :  { %v305_v33 = vld [vmem:[#allocation5 + $0x628] sm:$0xff]  ;;  %v304_v41 = vld [vmem:[#allocation5 + $0x620] sm:$0xff]  ;;  %1644 = vmatpush1.bf16.msra.mxu0 %v1643_v35 }
  0x92   :  { %v1645_v40 = vpack.c.bf16 %v305_v33, %v301_v32  ;;  %v181_v42 = vld [vmem:[#allocation5 + $0x248] sm:$0xff]  ;;  %1582 = vmatprep.subr.bf16.mxu1 %v1581_v36  ;;  %v1647_v47 = vpack.c.bf16 %v304_v41, %v300_v39  ;;  %v180_v49 = vld [vmem:[#allocation5 + $0x240] sm:$0xff] }
  0x93   :  { %v185_v43 = vld [vmem:[#allocation5 + $0x268] sm:$0xff]  ;;  %v184_v50 = vld [vmem:[#allocation5 + $0x260] sm:$0xff]  ;;  %1584 = vmatpush1.bf16.msra.mxu1 %v1583_v46 }
  0x94   :  { %v309_v44 = vld [vmem:[#allocation5 + $0x648] sm:$0xff]  ;;  %v1585_v48 = vpack.c.bf16 %v185_v43, %v181_v42  ;;  %v308_v51 = vld [vmem:[#allocation5 + $0x640] sm:$0xff]  ;;  %1646 = vmatprep.subr.bf16.mxu0 %v1645_v40  ;;  %v1587_v58 = vpack.c.bf16 %v184_v50, %v180_v49 }
  0x95   :  { %v313_v45 = vld [vmem:[#allocation5 + $0x668] sm:$0xff]  ;;  %v312_v53 = vld [vmem:[#allocation5 + $0x660] sm:$0xff]  ;;  %1648 = vmatpush1.bf16.msra.mxu0 %v1647_v47 }
  0x96   :  { %v1649_v52 = vpack.c.bf16 %v313_v45, %v309_v44  ;;  %v189_v54 = vld [vmem:[#allocation5 + $0x288] sm:$0xff]  ;;  %1586 = vmatprep.subr.bf16.mxu1 %v1585_v48  ;;  %v1651_v59 = vpack.c.bf16 %v312_v53, %v308_v51  ;;  %v188_v61 = vld [vmem:[#allocation5 + $0x280] sm:$0xff] }
  0x97   :  { %v193_v55 = vld [vmem:[#allocation5 + $0x2a8] sm:$0xff]  ;;  %v192_v62 = vld [vmem:[#allocation5 + $0x2a0] sm:$0xff]  ;;  %1588 = vmatpush1.bf16.msra.mxu1 %v1587_v58 }
  0x98   :  { %v317_v56 = vld [vmem:[#allocation5 + $0x688] sm:$0xff]  ;;  %v1589_v60 = vpack.c.bf16 %v193_v55, %v189_v54  ;;  %v316_v63 = vld [vmem:[#allocation5 + $0x680] sm:$0xff]  ;;  %1650 = vmatprep.subr.bf16.mxu0 %v1649_v52  ;;  %v1591_v6 = vpack.c.bf16 %v192_v62, %v188_v61 }
  0x99   :  { %v321_v57 = vld [vmem:[#allocation5 + $0x6a8] sm:$0xff]  ;;  %v320_v1 = vld [vmem:[#allocation5 + $0x6a0] sm:$0xff]  ;;  %1652 = vmatpush1.bf16.msra.mxu0 %v1651_v59 }
  0x9a   :  { %v1653_v0 = vpack.c.bf16 %v321_v57, %v317_v56  ;;  %v197_v2 = vld [vmem:[#allocation5 + $0x2c8] sm:$0xff]  ;;  %v196_v7 = vld [vmem:[#allocation5 + $0x2c0] sm:$0xff]  ;;  %1590 = vmatprep.subr.bf16.mxu1 %v1589_v60  ;;  %v1655_v8 = vpack.c.bf16 %v320_v1, %v316_v63  ;;  %v115_v1 = vld [vmem:[#allocation5 + $0x38] sm:$0xff] }
  0x9b   :  { %v201_v3 = vld [vmem:[#allocation5 + $0x2e8] sm:$0xff]  ;;  %v200_v10 = vld [vmem:[#allocation5 + $0x2e0] sm:$0xff]  ;;  %1592 = vmatpush1.bf16.msra.mxu1 %v1591_v6 }
  0x9c   :  { %v325_v4 = vld [vmem:[#allocation5 + $0x6c8] sm:$0xff]  ;;  %v1593_v9 = vpack.c.bf16 %v201_v3, %v197_v2  ;;  %v324_v11 = vld [vmem:[#allocation5 + $0x6c0] sm:$0xff]  ;;  %1654 = vmatprep.subr.bf16.mxu0 %v1653_v0  ;;  %v1595_v20 = vpack.c.bf16 %v200_v10, %v196_v7  ;;  %v111_v0 = vld [vmem:[#allocation5 + $0x18] sm:$0xff] }
  0x9d   :  { %v329_v5 = vld [vmem:[#allocation5 + $0x6e8] sm:$0xff]  ;;  %v328_v12 = vld [vmem:[#allocation5 + $0x6e0] sm:$0xff]  ;;  %1656 = vmatpush1.bf16.msra.mxu0 %v1655_v8  ;;  %v1745_v6 = vpack.c.bf16 %v115_v1, %v111_v0  ;;  %v110_v8 = vld [vmem:[#allocation5 + $0x10] sm:$0xff] }
  0x9e   :  { %v1657_v13 = vpack.c.bf16 %v329_v5, %v325_v4  ;;  %v205_v14 = vld [vmem:[#allocation5 + $0x308] sm:$0xff]  ;;  %v2424_v19 = vld [vmem:[#allocation2 + $0x18] sm:$0xff]  ;;  %1594 = vmatprep.subr.bf16.mxu1 %v1593_v9  ;;  %v1659_v21 = vpack.c.bf16 %v328_v12, %v324_v11  ;;  %v114_v9 = vld [vmem:[#allocation5 + $0x30] sm:$0xff] }
  0x9f   :  { %v209_v15 = vld [vmem:[#allocation5 + $0x328] sm:$0xff]  ;;  %661 = vmatprep.mubr.f32.mxu0 %v2424_v19  ;;  %v204_v23 = vld [vmem:[#allocation5 + $0x300] sm:$0xff]  ;;  %1596 = vmatpush1.bf16.msra.mxu1 %v1595_v20  ;;  %v119_v12 = vld [vmem:[#allocation5 + $0x58] sm:$0xff]  ;;  %v1747_v20 = vpack.c.bf16 %v114_v9, %v110_v8 }
  0xa0   :  { %v333_v17 = vld [vmem:[#allocation5 + $0x708] sm:$0xff]  ;;  %v1597_v22 = vpack.c.bf16 %v209_v15, %v205_v14  ;;  %v208_v24 = vld [vmem:[#allocation5 + $0x320] sm:$0xff]  ;;  %1658 = vmatprep.subr.bf16.mxu0 %v1657_v13  ;;  %v123_v13 = vld [vmem:[#allocation5 + $0x78] sm:$0xff] }
  0xa1   :  { %v337_v18 = vld [vmem:[#allocation5 + $0x728] sm:$0xff]  ;;  %v332_v25 = vld [vmem:[#allocation5 + $0x700] sm:$0xff]  ;;  %v1599_v32 = vpack.c.bf16 %v208_v24, %v204_v23  ;;  %1660 = vmatpush1.bf16.msra.mxu0 %v1659_v21  ;;  %v118_v24 = vld [vmem:[#allocation5 + $0x50] sm:$0xff] }
  0xa2   :  { %v1661_v26 = vpack.c.bf16 %v337_v18, %v333_v17  ;;  %v336_v27 = vld [vmem:[#allocation5 + $0x720] sm:$0xff]  ;;  %v213_v28 = vld [vmem:[#allocation5 + $0x348] sm:$0xff]  ;;  %1598 = vmatprep.subr.bf16.mxu1 %v1597_v22  ;;  %v2429_v18 = vld [vmem:[#allocation2 + $0x10] sm:$0xff]  ;;  %v1749_v22 = vpack.c.bf16 %v123_v13, %v119_v12 }
  0xa3   :  { %v217_v29 = vld [vmem:[#allocation5 + $0x368] sm:$0xff]  ;;  %v1663_v33 = vpack.c.bf16 %v336_v27, %v332_v25  ;;  %v212_v35 = vld [vmem:[#allocation5 + $0x340] sm:$0xff]  ;;  %1600 = vmatpush1.bf16.msra.mxu1 %v1599_v32  ;;  %v122_v25 = vld [vmem:[#allocation5 + $0x70] sm:$0xff] }
  0xa4   :  { %v341_v30 = vld [vmem:[#allocation5 + $0x748] sm:$0xff]  ;;  %v1601_v34 = vpack.c.bf16 %v217_v29, %v213_v28  ;;  %v216_v36 = vld [vmem:[#allocation5 + $0x360] sm:$0xff]  ;;  %1662 = vmatprep.subr.bf16.mxu0 %v1661_v26  ;;  %v127_v28 = vld [vmem:[#allocation5 + $0x98] sm:$0xff]  ;;  %v1751_v32 = vpack.c.bf16 %v122_v25, %v118_v24 }
  0xa5   :  { %v345_v31 = vld [vmem:[#allocation5 + $0x768] sm:$0xff]  ;;  %v340_v37 = vld [vmem:[#allocation5 + $0x740] sm:$0xff]  ;;  %v1603_v44 = vpack.c.bf16 %v216_v36, %v212_v35  ;;  %1664 = vmatpush1.bf16.msra.mxu0 %v1663_v33  ;;  %v131_v29 = vld [vmem:[#allocation5 + $0xb8] sm:$0xff] }
  0xa6   :  { %v1665_v38 = vpack.c.bf16 %v345_v31, %v341_v30  ;;  %v344_v39 = vld [vmem:[#allocation5 + $0x760] sm:$0xff]  ;;  %v221_v40 = vld [vmem:[#allocation5 + $0x388] sm:$0xff]  ;;  %1602 = vmatprep.subr.bf16.mxu1 %v1601_v34  ;;  %v1753_v34 = vpack.c.bf16 %v131_v29, %v127_v28  ;;  %v126_v36 = vld [vmem:[#allocation5 + $0x90] sm:$0xff] }
  0xa7   :  { %v225_v41 = vld [vmem:[#allocation5 + $0x3a8] sm:$0xff]  ;;  %v1667_v45 = vpack.c.bf16 %v344_v39, %v340_v37  ;;  %v220_v47 = vld [vmem:[#allocation5 + $0x380] sm:$0xff]  ;;  %1604 = vmatpush1.bf16.msra.mxu1 %v1603_v44  ;;  %v130_v37 = vld [vmem:[#allocation5 + $0xb0] sm:$0xff] }
  0xa8   :  { %v349_v42 = vld [vmem:[#allocation5 + $0x788] sm:$0xff]  ;;  %v1605_v46 = vpack.c.bf16 %v225_v41, %v221_v40  ;;  %v224_v48 = vld [vmem:[#allocation5 + $0x3a0] sm:$0xff]  ;;  %1666 = vmatprep.subr.bf16.mxu0 %v1665_v38  ;;  %v135_v40 = vld [vmem:[#allocation5 + $0xd8] sm:$0xff]  ;;  %v1755_v44 = vpack.c.bf16 %v130_v37, %v126_v36 }
  0xa9   :  { %v353_v43 = vld [vmem:[#allocation5 + $0x7a8] sm:$0xff]  ;;  %v348_v49 = vld [vmem:[#allocation5 + $0x780] sm:$0xff]  ;;  %v1607_v56 = vpack.c.bf16 %v224_v48, %v220_v47  ;;  %1668 = vmatpush1.bf16.msra.mxu0 %v1667_v45  ;;  %v139_v41 = vld [vmem:[#allocation5 + $0xf8] sm:$0xff] }
  0xaa   :  { %v1669_v50 = vpack.c.bf16 %v353_v43, %v349_v42  ;;  %v352_v51 = vld [vmem:[#allocation5 + $0x7a0] sm:$0xff]  ;;  %v229_v52 = vld [vmem:[#allocation5 + $0x3c8] sm:$0xff]  ;;  %1606 = vmatprep.subr.bf16.mxu1 %v1605_v46  ;;  %v1757_v46 = vpack.c.bf16 %v139_v41, %v135_v40  ;;  %v134_v48 = vld [vmem:[#allocation5 + $0xd0] sm:$0xff] }
  0xab   :  { %v233_v53 = vld [vmem:[#allocation5 + $0x3e8] sm:$0xff]  ;;  %v1671_v57 = vpack.c.bf16 %v352_v51, %v348_v49  ;;  %v228_v59 = vld [vmem:[#allocation5 + $0x3c0] sm:$0xff]  ;;  %1608 = vmatpush1.bf16.msra.mxu1 %v1607_v56  ;;  %v138_v49 = vld [vmem:[#allocation5 + $0xf0] sm:$0xff] }
  0xac   :  { %v357_v54 = vld [vmem:[#allocation5 + $0x7c8] sm:$0xff]  ;;  %v1609_v58 = vpack.c.bf16 %v233_v53, %v229_v52  ;;  %v232_v60 = vld [vmem:[#allocation5 + $0x3e0] sm:$0xff]  ;;  %1670 = vmatprep.subr.bf16.mxu0 %v1669_v50  ;;  %v143_v52 = vld [vmem:[#allocation5 + $0x118] sm:$0xff] }
  0xad   :  { %v361_v55 = vld [vmem:[#allocation5 + $0x7e8] sm:$0xff]  ;;  %v356_v61 = vld [vmem:[#allocation5 + $0x7c0] sm:$0xff]  ;;  %v1611_v4 = vpack.c.bf16 %v232_v60, %v228_v59  ;;  %1672 = vmatpush1.bf16.msra.mxu0 %v1671_v57  ;;  %v147_v53 = vld [vmem:[#allocation5 + $0x138] sm:$0xff] }
  0xae   :  { %v1673_v62 = vpack.c.bf16 %v361_v55, %v357_v54  ;;  %v360_v63 = vld [vmem:[#allocation5 + $0x7e0] sm:$0xff]  ;;  %v365_v2 = vld [vmem:[#allocation5 + $0x808] sm:$0xff]  ;;  %1610 = vmatprep.subr.bf16.mxu1 %v1609_v58  ;;  %v1761_v57 = vpack.c.bf16 %v147_v53, %v143_v52  ;;  %v142_v59 = vld [vmem:[#allocation5 + $0x110] sm:$0xff] }
  0xaf   :  { %v369_v3 = vld [vmem:[#allocation5 + $0x828] sm:$0xff]  ;;  %v1675_v5 = vpack.c.bf16 %v360_v63, %v356_v61  ;;  %v364_v7 = vld [vmem:[#allocation5 + $0x800] sm:$0xff]  ;;  %1612 = vmatpush1.bf16.msra.mxu1 %v1611_v4  ;;  %v146_v60 = vld [vmem:[#allocation5 + $0x130] sm:$0xff] }
  0xb0   :  { %1674 = vmatprep.subr.bf16.mxu0 %v1673_v62  ;;  %v1677_v10 = vpack.c.bf16 %v369_v3, %v365_v2  ;;  %v368_v11 = vld [vmem:[#allocation5 + $0x820] sm:$0xff]  ;;  %v373_v14 = vld [vmem:[#allocation5 + $0x848] sm:$0xff]  ;;  %1746 = vmatprep.subr.bf16.mxu1 %v1745_v6  ;;  %v151_v63 = vld [vmem:[#allocation5 + $0x158] sm:$0xff]  ;;  %v1763_v3 = vpack.c.bf16 %v146_v60, %v142_v59 }
  0xb1   :  { %v377_v15 = vld [vmem:[#allocation5 + $0x868] sm:$0xff]  ;;  %1676 = vmatpush1.bf16.msra.mxu0 %v1675_v5  ;;  %v1679_v21 = vpack.c.bf16 %v368_v11, %v364_v7  ;;  %v372_v23 = vld [vmem:[#allocation5 + $0x840] sm:$0xff]  ;;  %v155_v0 = vld [vmem:[#allocation5 + $0x178] sm:$0xff] }
  0xb2   :  { %v2427_v17 = vld [vmem:[#allocation2] sm:$0xff]  ;;  %1678 = vmatprep.subr.bf16.mxu0 %v1677_v10  ;;  %v1681_v26 = vpack.c.bf16 %v377_v15, %v373_v14  ;;  %v376_v27 = vld [vmem:[#allocation5 + $0x860] sm:$0xff]  ;;  %v1765_v5 = vpack.c.bf16 %v155_v0, %v151_v63  ;;  %v150_v7 = vld [vmem:[#allocation5 + $0x150] sm:$0xff] }
  0xb3   :  { %591 = vmatmul.mubr.f32.vlgmr.msra.gmra.mrb[0].mxu1 %v2427_v17  ;;  %v381_v30 = vld [vmem:[#allocation5 + $0x888] sm:$0xff]  ;;  %v1683_v33 = vpack.c.bf16 %v376_v27, %v372_v23  ;;  %v380_v35 = vld [vmem:[#allocation5 + $0x880] sm:$0xff]  ;;  %v154_v8 = vld [vmem:[#allocation5 + $0x170] sm:$0xff] }
  0xb4   :  { %v385_v31 = vld [vmem:[#allocation5 + $0x8a8] sm:$0xff]  ;;  %662 = vmatmul.mubr.f32.vlgmr.msra.gmra.mrb[0].mxu0 %v2429_v18  ;;  %1748 = vmatpush1.bf16.msra.mxu1 %v1747_v20  ;;  %v384_v39 = vld [vmem:[#allocation5 + $0x8a0] sm:$0xff]  ;;  %v159_v11 = vld [vmem:[#allocation5 + $0x198] sm:$0xff]  ;;  %v1767_v15 = vpack.c.bf16 %v154_v8, %v150_v7 }
  0xb5   :  { %1680 = vmatpush1.bf16.msra.mxu0 %v1679_v21  ;;  %1750 = vmatprep.subr.bf16.mxu1 %v1749_v22  ;;  %v1685_v38 = vpack.c.bf16 %v385_v31, %v381_v30  ;;  %v389_v42 = vld [vmem:[#allocation5 + $0x8c8] sm:$0xff]  ;;  %v1687_v45 = vpack.c.bf16 %v384_v39, %v380_v35  ;;  %v388_v47 = vld [vmem:[#allocation5 + $0x8c0] sm:$0xff]  ;;  %v163_v12 = vld [vmem:[#allocation5 + $0x1b8] sm:$0xff] }
  0xb6   :  { %1682 = vmatprep.subr.bf16.mxu0 %v1681_v26  ;;  %874 = vmatprep.mubr.f32.mxu1 %v2421_v16  ;;  %v393_v43 = vld [vmem:[#allocation5 + $0x8e8] sm:$0xff]  ;;  %v392_v51 = vld [vmem:[#allocation5 + $0x8e0] sm:$0xff]  ;;  %v1759_v16 = vpack.c.bf16 %v138_v49, %v134_v48  ;;  %v1769_v22 = vpack.c.bf16 %v163_v12, %v159_v11  ;;  %v158_v24 = vld [vmem:[#allocation5 + $0x190] sm:$0xff] }
  0xb7   :  { %v1689_v50 = vpack.c.bf16 %v393_v43, %v389_v42  ;;  %v397_v54 = vld [vmem:[#allocation5 + $0x908] sm:$0xff]  ;;  %v1691_v56 = vpack.c.bf16 %v392_v51, %v388_v47  ;;  %v396_v58 = vld [vmem:[#allocation5 + $0x900] sm:$0xff]  ;;  %v162_v25 = vld [vmem:[#allocation5 + $0x1b0] sm:$0xff] }
  0xb8   :  { %1752 = vmatpush1.bf16.msra.mxu1 %v1751_v32  ;;  %v401_v55 = vld [vmem:[#allocation5 + $0x928] sm:$0xff]  ;;  %v400_v62 = vld [vmem:[#allocation5 + $0x920] sm:$0xff]  ;;  %v167_v27 = vld [vmem:[#allocation5 + $0x1d8] sm:$0xff]  ;;  %v1771_v32 = vpack.c.bf16 %v162_v25, %v158_v24 }
  0xb9   :  { %1684 = vmatpush1.bf16.msra.mxu0 %v1683_v33  ;;  %1754 = vmatprep.subr.bf16.mxu1 %v1753_v34  ;;  %v1693_v61 = vpack.c.bf16 %v401_v55, %v397_v54  ;;  %v405_v1 = vld [vmem:[#allocation5 + $0x948] sm:$0xff]  ;;  %v1695_v4 = vpack.c.bf16 %v400_v62, %v396_v58  ;;  %v404_v6 = vld [vmem:[#allocation5 + $0x940] sm:$0xff]  ;;  %v171_v28 = vld [vmem:[#allocation5 + $0x1f8] sm:$0xff] }
  0xba   :  { %1686 = vmatprep.subr.bf16.mxu0 %v1685_v38  ;;  %v409_v2 = vld [vmem:[#allocation5 + $0x968] sm:$0xff]  ;;  %v408_v10 = vld [vmem:[#allocation5 + $0x960] sm:$0xff]  ;;  %v2434_v29 = vld [vmem:[#allocation2 + $0x28] sm:$0xff]  ;;  %v1773_v34 = vpack.c.bf16 %v171_v28, %v167_v27 }
  0xbb   :  { %v1697_v9 = vpack.c.bf16 %v409_v2, %v405_v1  ;;  %v413_v13 = vld [vmem:[#allocation5 + $0x988] sm:$0xff]  ;;  %v412_v20 = vld [vmem:[#allocation5 + $0x980] sm:$0xff]  ;;  %v1699_v21 = vpack.c.bf16 %v408_v10, %v404_v6  ;;  %732 = vmatprep.mubr.f32.mxu0 %v2434_v29  ;;  %v166_v36 = vld [vmem:[#allocation5 + $0x1d0] sm:$0xff] }
  0xbc   :  { %1756 = vmatpush1.bf16.msra.mxu1 %v1755_v44  ;;  %v417_v14 = vld [vmem:[#allocation5 + $0x9a8] sm:$0xff]  ;;  %v416_v23 = vld [vmem:[#allocation5 + $0x9a0] sm:$0xff]  ;;  %v170_v37 = vld [vmem:[#allocation5 + $0x1f0] sm:$0xff] }
  0xbd   :  { %1688 = vmatpush1.bf16.msra.mxu0 %v1687_v45  ;;  %1758 = vmatprep.subr.bf16.mxu1 %v1757_v46  ;;  %v1701_v26 = vpack.c.bf16 %v417_v14, %v413_v13  ;;  %v421_v30 = vld [vmem:[#allocation5 + $0x9c8] sm:$0xff]  ;;  %v1703_v33 = vpack.c.bf16 %v416_v23, %v412_v20  ;;  %v420_v35 = vld [vmem:[#allocation5 + $0x9c0] sm:$0xff]  ;;  %v175_v40 = vld [vmem:[#allocation5 + $0x218] sm:$0xff]  ;;  %v1775_v44 = vpack.c.bf16 %v170_v37, %v166_v36 }
  0xbe   :  { %1690 = vmatprep.subr.bf16.mxu0 %v1689_v50  ;;  %v425_v31 = vld [vmem:[#allocation5 + $0x9e8] sm:$0xff]  ;;  %v424_v39 = vld [vmem:[#allocation5 + $0x9e0] sm:$0xff]  ;;  %v179_v41 = vld [vmem:[#allocation5 + $0x238] sm:$0xff] }
  0xbf   :  { %v1705_v38 = vpack.c.bf16 %v425_v31, %v421_v30  ;;  %v429_v42 = vld [vmem:[#allocation5 + $0xa08] sm:$0xff]  ;;  %v1707_v45 = vpack.c.bf16 %v424_v39, %v420_v35  ;;  %v1777_v46 = vpack.c.bf16 %v179_v41, %v175_v40  ;;  %v428_v47 = vld [vmem:[#allocation5 + $0xa00] sm:$0xff]  ;;  %v174_v48 = vld [vmem:[#allocation5 + $0x210] sm:$0xff] }
  0xc0   :  { %1760 = vmatpush1.bf16.msra.mxu1 %v1759_v16  ;;  %v433_v43 = vld [vmem:[#allocation5 + $0xa28] sm:$0xff]  ;;  %v178_v49 = vld [vmem:[#allocation5 + $0x230] sm:$0xff]  ;;  %v432_v51 = vld [vmem:[#allocation5 + $0xa20] sm:$0xff] }
  0xc1   :  { %1692 = vmatpush1.bf16.msra.mxu0 %v1691_v56  ;;  %1762 = vmatprep.subr.bf16.mxu1 %v1761_v57  ;;  %v1709_v50 = vpack.c.bf16 %v433_v43, %v429_v42  ;;  %v183_v52 = vld [vmem:[#allocation5 + $0x258] sm:$0xff]  ;;  %v437_v54 = vld [vmem:[#allocation5 + $0xa48] sm:$0xff]  ;;  %v1779_v16 = vpack.c.bf16 %v178_v49, %v174_v48  ;;  %v1711_v56 = vpack.c.bf16 %v432_v51, %v428_v47  ;;  %v436_v58 = vld [vmem:[#allocation5 + $0xa40] sm:$0xff] }
  0xc2   :  { %1694 = vmatprep.subr.bf16.mxu0 %v1693_v61  ;;  %v187_v53 = vld [vmem:[#allocation5 + $0x278] sm:$0xff]  ;;  %v441_v55 = vld [vmem:[#allocation5 + $0xa68] sm:$0xff]  ;;  %v182_v59 = vld [vmem:[#allocation5 + $0x250] sm:$0xff] }
  0xc3   :  { %v1781_v57 = vpack.c.bf16 %v187_v53, %v183_v52  ;;  %v186_v60 = vld [vmem:[#allocation5 + $0x270] sm:$0xff]  ;;  %v1713_v61 = vpack.c.bf16 %v441_v55, %v437_v54  ;;  %v440_v62 = vld [vmem:[#allocation5 + $0xa60] sm:$0xff]  ;;  %v191_v63 = vld [vmem:[#allocation5 + $0x298] sm:$0xff] }
  0xc4   :  { %1764 = vmatpush1.bf16.msra.mxu1 %v1763_v3  ;;  %v195_v0 = vld [vmem:[#allocation5 + $0x2b8] sm:$0xff]  ;;  %v445_v1 = vld [vmem:[#allocation5 + $0xa88] sm:$0xff]  ;;  %v1783_v3 = vpack.c.bf16 %v186_v60, %v182_v59  ;;  %v444_v6 = vld [vmem:[#allocation5 + $0xa80] sm:$0xff] }
  0xc5   :  { %1696 = vmatpush1.bf16.msra.mxu0 %v1695_v4  ;;  %1766 = vmatprep.subr.bf16.mxu1 %v1765_v5  ;;  %v449_v2 = vld [vmem:[#allocation5 + $0xaa8] sm:$0xff]  ;;  %v1715_v4 = vpack.c.bf16 %v440_v62, %v436_v58  ;;  %v1785_v5 = vpack.c.bf16 %v195_v0, %v191_v63  ;;  %v190_v7 = vld [vmem:[#allocation5 + $0x290] sm:$0xff]  ;;  %v448_v10 = vld [vmem:[#allocation5 + $0xaa0] sm:$0xff] }
  0xc6   :  { %1698 = vmatprep.subr.bf16.mxu0 %v1697_v9  ;;  %v194_v8 = vld [vmem:[#allocation5 + $0x2b0] sm:$0xff]  ;;  %v1717_v9 = vpack.c.bf16 %v449_v2, %v445_v1  ;;  %v199_v11 = vld [vmem:[#allocation5 + $0x2d8] sm:$0xff]  ;;  %v453_v13 = vld [vmem:[#allocation5 + $0xac8] sm:$0xff]  ;;  %v1719_v20 = vpack.c.bf16 %v448_v10, %v444_v6 }
  0xc7   :  { %v203_v12 = vld [vmem:[#allocation5 + $0x2f8] sm:$0xff]  ;;  %v457_v14 = vld [vmem:[#allocation5 + $0xae8] sm:$0xff]  ;;  %v198_v23 = vld [vmem:[#allocation5 + $0x2d0] sm:$0xff] }
  0xc8   :  { %1768 = vmatpush1.bf16.msra.mxu1 %v1767_v15  ;;  %v1787_v15 = vpack.c.bf16 %v194_v8, %v190_v7  ;;  %v202_v24 = vld [vmem:[#allocation5 + $0x2f0] sm:$0xff]  ;;  %v1721_v25 = vpack.c.bf16 %v457_v14, %v453_v13  ;;  %v207_v27 = vld [vmem:[#allocation5 + $0x318] sm:$0xff]  ;;  %v461_v30 = vld [vmem:[#allocation5 + $0xb08] sm:$0xff] }
  0xc9   :  { %1700 = vmatpush1.bf16.msra.mxu0 %v1699_v21  ;;  %1770 = vmatprep.subr.bf16.mxu1 %v1769_v22  ;;  %v1789_v21 = vpack.c.bf16 %v203_v12, %v199_v11  ;;  %v452_v22 = vld [vmem:[#allocation5 + $0xac0] sm:$0xff]  ;;  %v211_v28 = vld [vmem:[#allocation5 + $0x338] sm:$0xff]  ;;  %v465_v31 = vld [vmem:[#allocation5 + $0xb28] sm:$0xff] }
  0xca   :  { %1702 = vmatprep.subr.bf16.mxu0 %v1701_v26  ;;  %v456_v26 = vld [vmem:[#allocation5 + $0xae0] sm:$0xff]  ;;  %v206_v36 = vld [vmem:[#allocation5 + $0x310] sm:$0xff]  ;;  %v215_v40 = vld [vmem:[#allocation5 + $0x358] sm:$0xff] }
  0xcb   :  { %v460_v35 = vld [vmem:[#allocation5 + $0xb00] sm:$0xff]  ;;  %v210_v37 = vld [vmem:[#allocation5 + $0x330] sm:$0xff]  ;;  %v219_v41 = vld [vmem:[#allocation5 + $0x378] sm:$0xff] }
  0xcc   :  { %1772 = vmatpush1.bf16.msra.mxu1 %v1771_v32  ;;  %v1791_v32 = vpack.c.bf16 %v202_v24, %v198_v23  ;;  %v464_v39 = vld [vmem:[#allocation5 + $0xb20] sm:$0xff]  ;;  %v469_v42 = vld [vmem:[#allocation5 + $0xb48] sm:$0xff]  ;;  %v214_v48 = vld [vmem:[#allocation5 + $0x350] sm:$0xff] }
  0xcd   :  { %1704 = vmatpush1.bf16.msra.mxu0 %v1703_v33  ;;  %1774 = vmatprep.subr.bf16.mxu1 %v1773_v34  ;;  %v1723_v33 = vpack.c.bf16 %v456_v26, %v452_v22  ;;  %v1793_v34 = vpack.c.bf16 %v211_v28, %v207_v27  ;;  %v473_v43 = vld [vmem:[#allocation5 + $0xb68] sm:$0xff]  ;;  %v468_v47 = vld [vmem:[#allocation5 + $0xb40] sm:$0xff]  ;;  %v218_v49 = vld [vmem:[#allocation5 + $0x370] sm:$0xff] }
  0xce   :  { %1706 = vmatprep.subr.bf16.mxu0 %v1705_v38  ;;  %v1725_v38 = vpack.c.bf16 %v465_v31, %v461_v30  ;;  %v472_v51 = vld [vmem:[#allocation5 + $0xb60] sm:$0xff]  ;;  %v223_v52 = vld [vmem:[#allocation5 + $0x398] sm:$0xff]  ;;  %v477_v54 = vld [vmem:[#allocation5 + $0xb88] sm:$0xff] }
  0xcf   :  { %v227_v53 = vld [vmem:[#allocation5 + $0x3b8] sm:$0xff]  ;;  %v481_v55 = vld [vmem:[#allocation5 + $0xba8] sm:$0xff]  ;;  %v476_v58 = vld [vmem:[#allocation5 + $0xb80] sm:$0xff] }
  0xd0   :  { %1776 = vmatpush1.bf16.msra.mxu1 %v1775_v44  ;;  %v1795_v44 = vpack.c.bf16 %v210_v37, %v206_v36  ;;  %v222_v59 = vld [vmem:[#allocation5 + $0x390] sm:$0xff]  ;;  %v480_v62 = vld [vmem:[#allocation5 + $0xba0] sm:$0xff]  ;;  %v231_v63 = vld [vmem:[#allocation5 + $0x3d8] sm:$0xff] }
  0xd1   :  { %1708 = vmatpush1.bf16.msra.mxu0 %v1707_v45  ;;  %1778 = vmatprep.subr.bf16.mxu1 %v1777_v46  ;;  %v1727_v45 = vpack.c.bf16 %v464_v39, %v460_v35  ;;  %v1797_v46 = vpack.c.bf16 %v219_v41, %v215_v40  ;;  %v226_v60 = vld [vmem:[#allocation5 + $0x3b0] sm:$0xff]  ;;  %v235_v0 = vld [vmem:[#allocation5 + $0x3f8] sm:$0xff]  ;;  %v485_v1 = vld [vmem:[#allocation5 + $0xbc8] sm:$0xff] }
  0xd2   :  { %1710 = vmatprep.subr.bf16.mxu0 %v1709_v50  ;;  %v1729_v50 = vpack.c.bf16 %v473_v43, %v469_v42  ;;  %v489_v2 = vld [vmem:[#allocation5 + $0xbe8] sm:$0xff]  ;;  %v484_v6 = vld [vmem:[#allocation5 + $0xbc0] sm:$0xff]  ;;  %v230_v7 = vld [vmem:[#allocation5 + $0x3d0] sm:$0xff] }
  0xd3   :  { %v234_v8 = vld [vmem:[#allocation5 + $0x3f0] sm:$0xff]  ;;  %v488_v10 = vld [vmem:[#allocation5 + $0xbe0] sm:$0xff]  ;;  %v239_v11 = vld [vmem:[#allocation5 + $0x418] sm:$0xff] }
  0xd4   :  { %1780 = vmatpush1.bf16.msra.mxu1 %v1779_v16  ;;  %v1799_v16 = vpack.c.bf16 %v218_v49, %v214_v48  ;;  %v243_v12 = vld [vmem:[#allocation5 + $0x438] sm:$0xff]  ;;  %v493_v13 = vld [vmem:[#allocation5 + $0xc08] sm:$0xff]  ;;  %v238_v22 = vld [vmem:[#allocation5 + $0x410] sm:$0xff] }
  0xd5   :  { %1712 = vmatpush1.bf16.msra.mxu0 %v1711_v56  ;;  %1782 = vmatprep.subr.bf16.mxu1 %v1781_v57  ;;  %v1731_v56 = vpack.c.bf16 %v472_v51, %v468_v47  ;;  %v1801_v57 = vpack.c.bf16 %v227_v53, %v223_v52  ;;  %v497_v14 = vld [vmem:[#allocation5 + $0xc28] sm:$0xff]  ;;  %v242_v23 = vld [vmem:[#allocation5 + $0x430] sm:$0xff]  ;;  %v247_v24 = vld [vmem:[#allocation5 + $0x458] sm:$0xff] }
  0xd6   :  { %1714 = vmatprep.subr.bf16.mxu0 %v1713_v61  ;;  %v1733_v61 = vpack.c.bf16 %v481_v55, %v477_v54  ;;  %v251_v26 = vld [vmem:[#allocation5 + $0x478] sm:$0xff]  ;;  %v492_v27 = vld [vmem:[#allocation5 + $0xc00] sm:$0xff]  ;;  %v1811_v30 = vpack.c.bf16 %v242_v23, %v238_v22  ;;  %v2437_v31 = vld [vmem:[#allocation2 + $0x20] sm:$0xff] }
  0xd7   :  { %v496_v28 = vld [vmem:[#allocation5 + $0xc20] sm:$0xff]  ;;  %v250_v35 = vld [vmem:[#allocation5 + $0x470] sm:$0xff]  ;;  %v255_v36 = vld [vmem:[#allocation5 + $0x498] sm:$0xff] }
  0xd8   :  { %1784 = vmatpush1.bf16.msra.mxu1 %v1783_v3  ;;  %v1803_v3 = vpack.c.bf16 %v226_v60, %v222_v59  ;;  %v259_v37 = vld [vmem:[#allocation5 + $0x4b8] sm:$0xff]  ;;  %v254_v42 = vld [vmem:[#allocation5 + $0x490] sm:$0xff] }
  0xd9   :  { %1716 = vmatpush1.bf16.msra.mxu0 %v1715_v4  ;;  %1786 = vmatprep.subr.bf16.mxu1 %v1785_v5  ;;  %v1735_v4 = vpack.c.bf16 %v480_v62, %v476_v58  ;;  %v1805_v5 = vpack.c.bf16 %v235_v0, %v231_v63  ;;  %v499_v40 = vld [vmem:[#allocation5 + $0xc38] sm:$0xff]  ;;  %v1817_v41 = vpack.c.bf16 %v259_v37, %v255_v36  ;;  %v258_v43 = vld [vmem:[#allocation5 + $0x4b0] sm:$0xff] }
  0xda   :  { %1718 = vmatprep.subr.bf16.mxu0 %v1717_v9  ;;  %v1737_v9 = vpack.c.bf16 %v489_v2, %v485_v1  ;;  %v267_v47 = vld [vmem:[#allocation5 + $0x4f8] sm:$0xff]  ;;  %v494_v48 = vld [vmem:[#allocation5 + $0xc10] sm:$0xff]  ;;  %v1819_v49 = vpack.c.bf16 %v258_v43, %v254_v42 }
  0xdb   :  { %v262_v52 = vld [vmem:[#allocation5 + $0x4d0] sm:$0xff]  ;;  %v271_v55 = vld [vmem:[#allocation5 + $0x518] sm:$0xff] }
  0xdc   :  { %1788 = vmatpush1.bf16.msra.mxu1 %v1787_v15  ;;  %v1807_v15 = vpack.c.bf16 %v234_v8, %v230_v7  ;;  %v266_v53 = vld [vmem:[#allocation5 + $0x4f0] sm:$0xff]  ;;  %v279_v59 = vld [vmem:[#allocation5 + $0x558] sm:$0xff] }
  0xdd   :  { %1720 = vmatpush1.bf16.msra.mxu0 %v1719_v20  ;;  %1790 = vmatprep.subr.bf16.mxu1 %v1789_v21  ;;  %v1739_v20 = vpack.c.bf16 %v488_v10, %v484_v6  ;;  %v1809_v21 = vpack.c.bf16 %v243_v12, %v239_v11  ;;  %v274_v58 = vld [vmem:[#allocation5 + $0x530] sm:$0xff]  ;;  %v283_v60 = vld [vmem:[#allocation5 + $0x578] sm:$0xff] }
  0xde   :  { %1722 = vmatprep.subr.bf16.mxu0 %v1721_v25  ;;  %v1741_v25 = vpack.c.bf16 %v497_v14, %v493_v13  ;;  %v1829_v62 = vpack.c.bf16 %v283_v60, %v279_v59  ;;  %v278_v63 = vld [vmem:[#allocation5 + $0x550] sm:$0xff]  ;;  %v287_v1 = vld [vmem:[#allocation5 + $0x598] sm:$0xff] }
  0xdf   :  { %v282_v0 = vld [vmem:[#allocation5 + $0x570] sm:$0xff]  ;;  %v291_v2 = vld [vmem:[#allocation5 + $0x5b8] sm:$0xff] }
  0xe0   :  { %1792 = vmatpush1.bf16.msra.mxu1 %v1791_v32  ;;  %v1813_v32 = vpack.c.bf16 %v251_v26, %v247_v24  ;;  %v290_v6 = vld [vmem:[#allocation5 + $0x5b0] sm:$0xff]  ;;  %v295_v7 = vld [vmem:[#allocation5 + $0x5d8] sm:$0xff] }
  0xe1   :  { %1724 = vmatpush1.bf16.msra.mxu0 %v1723_v33  ;;  %1794 = vmatprep.subr.bf16.mxu1 %v1793_v34  ;;  %v1743_v33 = vpack.c.bf16 %v496_v28, %v492_v27  ;;  %v246_v34 = vld [vmem:[#allocation5 + $0x450] sm:$0xff]  ;;  %v299_v8 = vld [vmem:[#allocation5 + $0x5f8] sm:$0xff]  ;;  %v1102_v28 = vld [vmem:[#allocation8 + $0x20] sm:$0xff] }
  0xe2   :  { %1726 = vmatprep.subr.bf16.mxu0 %v1725_v38  ;;  %v495_v38 = vld [vmem:[#allocation5 + $0xc18] sm:$0xff]  ;;  %v1815_v39 = vpack.c.bf16 %v250_v35, %v246_v34  ;;  %v298_v10 = vld [vmem:[#allocation5 + $0x5f0] sm:$0xff] }
  0xe3   :  { %v303_v12 = vld [vmem:[#allocation5 + $0x618] sm:$0xff]  ;;  %v1099_v14 = vld [vmem:[#allocation8 + $0x8] sm:$0xff] }
  0xe4   :  { %1796 = vmatpush1.bf16.msra.mxu1 %v1795_v44  ;;  %v263_v44 = vld [vmem:[#allocation5 + $0x4d8] sm:$0xff]  ;;  %v1103_v24 = vld [vmem:[#allocation8 + $0x28] sm:$0xff] }
  0xe5   :  { %1728 = vmatpush1.bf16.msra.mxu0 %v1727_v45  ;;  %1798 = vmatprep.subr.bf16.mxu1 %v1797_v46  ;;  %v1937_v45 = vpack.c.bf16 %v499_v40, %v495_v38  ;;  %v2307_v46 = vmov 0.0   ;;  %v1821_v51 = vpack.c.bf16 %v267_v47, %v263_v44  ;;  %v307_v13 = vld [vmem:[#allocation5 + $0x638] sm:$0xff]  ;;  %v302_v35 = vld [vmem:[#allocation5 + $0x610] sm:$0xff] }
  0xe6   :  { %1730 = vmatprep.subr.bf16.mxu0 %v1729_v50  ;;  %v107_v50 = vld [vmem:[#allocation2 + $0x30] sm:$0xff]  ;;  %v306_v36 = vld [vmem:[#allocation5 + $0x630] sm:$0xff]  ;;  %v1841_v38 = vpack.c.bf16 %v307_v13, %v303_v12 }
  0xe7   :  { %v1100_v23 = vld [vmem:[#allocation8 + $0x10] sm:$0xff]  ;;  %v1111_v44 = vld [vmem:[#allocation8 + $0x68] sm:$0xff] }
  0xe8   :  { %1800 = vmatpush1.bf16.msra.mxu1 %v1799_v16  ;;  %v275_v16 = vld [vmem:[#allocation5 + $0x538] sm:$0xff]  ;;  %v310_v47 = vld [vmem:[#allocation5 + $0x650] sm:$0xff] }
  0xe9   :  { %1732 = vmatpush1.bf16.msra.mxu0 %v1731_v56  ;;  %1802 = vmatprep.subr.bf16.mxu1 %v1801_v57  ;;  %v1823_v56 = vpack.c.bf16 %v266_v53, %v262_v52  ;;  %v270_v57 = vld [vmem:[#allocation5 + $0x510] sm:$0xff]  ;;  %v315_v43 = vld [vmem:[#allocation5 + $0x678] sm:$0xff]  ;;  %v1110_v52 = vld [vmem:[#allocation8 + $0x60] sm:$0xff] }
  0xea   :  { %1734 = vmatprep.subr.bf16.mxu0 %v1733_v61  ;;  %v1827_v61 = vpack.c.bf16 %v274_v58, %v270_v57  ;;  %v1108_v42 = vld [vmem:[#allocation8 + $0x50] sm:$0xff]  ;;  %v1123_v13 = vld [vmem:[#allocation8 + $0xc8] sm:$0xff] }
  0xeb   :  { %v1112_v53 = vld [vmem:[#allocation8 + $0x70] sm:$0xff] }
  0xec   :  { %1804 = vmatpush1.bf16.msra.mxu1 %v1803_v3  ;;  %v1831_v3 = vpack.c.bf16 %v282_v0, %v278_v63  ;;  %v322_v57 = vld [vmem:[#allocation5 + $0x6b0] sm:$0xff]  ;;  %v1955_v58 = vpack.c.bf16 %v1112_v53, %v1110_v52  ;;  %v327_v60 = vld [vmem:[#allocation5 + $0x6d8] sm:$0xff] }
  0xed   :  { %1736 = vmatpush1.bf16.msra.mxu0 %v1735_v4  ;;  %1806 = vmatprep.subr.bf16.mxu1 %v1805_v5  ;;  %v1833_v4 = vpack.c.bf16 %v291_v2, %v287_v1  ;;  %v286_v5 = vld [vmem:[#allocation5 + $0x590] sm:$0xff]  ;;  %v331_v0 = vld [vmem:[#allocation5 + $0x6f8] sm:$0xff] }
  0xee   :  { %1738 = vmatprep.subr.bf16.mxu0 %v1737_v9  ;;  %v294_v9 = vld [vmem:[#allocation5 + $0x5d0] sm:$0xff]  ;;  %v1835_v11 = vpack.c.bf16 %v290_v6, %v286_v5  ;;  %v1121_v2 = vld [vmem:[#allocation8 + $0xb8] sm:$0xff] }
  0xef   :  { %v1839_v34 = vpack.c.bf16 %v298_v10, %v294_v9  ;;  %v1116_v63 = vld [vmem:[#allocation8 + $0x90] sm:$0xff]  ;;  %v1119_v1 = vld [vmem:[#allocation8 + $0xa8] sm:$0xff]  ;;  %v1118_v10 = vld [vmem:[#allocation8 + $0xa0] sm:$0xff] }
  0xf0   :  { %1808 = vmatpush1.bf16.msra.mxu1 %v1807_v15  ;;  %v1101_v15 = vld [vmem:[#allocation8 + $0x18] sm:$0xff]  ;;  %v330_v5 = vld [vmem:[#allocation5 + $0x6f0] sm:$0xff]  ;;  %v1961_v9 = vpack.c.bf16 %v1121_v2, %v1119_v1 }
  0xf1   :  { %1740 = vmatpush1.bf16.msra.mxu0 %v1739_v20  ;;  %1810 = vmatprep.subr.bf16.mxu1 %v1809_v21  ;;  %v1098_v20 = vld [vmem:[#allocation8] sm:$0xff]  ;;  %v1837_v21 = vpack.c.bf16 %v299_v8, %v295_v7  ;;  %v1941_v22 = vpack.c.bf16 %v1101_v15, %v1099_v14  ;;  %v1853_v7 = vpack.c.bf16 %v331_v0, %v327_v60  ;;  %v335_v8 = vld [vmem:[#allocation5 + $0x718] sm:$0xff]  ;;  %v1139_v0 = vld [vmem:[#allocation8 + $0x148] sm:$0xff] }
  0xf2   :  { %1742 = vmatprep.subr.bf16.mxu0 %v1741_v25  ;;  %v1105_v25 = vld [vmem:[#allocation8 + $0x38] sm:$0xff]  ;;  %v1943_v26 = vpack.c.bf16 %v1100_v23, %v1098_v20  ;;  %v334_v20 = vld [vmem:[#allocation5 + $0x710] sm:$0xff] }
  0xf3   :  { %875 = vmatmul.mubr.f32.vlgmr.msra.gmra.mrb[2].mxu1 %v2427_v17  ;;  %v498_v17 = vld [vmem:[#allocation5 + $0xc30] sm:$0xff]  ;;  %v1945_v27 = vpack.c.bf16 %v1105_v25, %v1103_v24  ;;  %v339_v12 = vld [vmem:[#allocation5 + $0x738] sm:$0xff] }
  0xf4   :  { %733 = vmatmul.mubr.f32.vlgmr.msra.gmra.mrb[0].mxu0 %v2437_v31  ;;  %1812 = vmatpush1.bf16.msra.mxu1 %v1811_v30  ;;  %v1939_v54 = vpack.c.bf16 %v498_v17, %v494_v48  ;;  %v1104_v30 = vld [vmem:[#allocation8 + $0x30] sm:$0xff]  ;;  %v1125_v14 = vld [vmem:[#allocation8 + $0xd8] sm:$0xff]  ;;  %v1857_v23 = vpack.c.bf16 %v339_v12, %v335_v8  ;;  %v1143_v12 = vld [vmem:[#allocation8 + $0x168] sm:$0xff] }
  0xf5   :  { %1814 = vmatprep.subr.bf16.mxu1 %v1813_v32  ;;  %1744 = vmatpush1.bf16.msra.mxu0 %v1743_v33  ;;  %v1107_v32 = vld [vmem:[#allocation8 + $0x48] sm:$0xff]  ;;  %v1109_v33 = vld [vmem:[#allocation8 + $0x58] sm:$0xff]  ;;  %v1947_v37 = vpack.c.bf16 %v1104_v30, %v1102_v28  ;;  %v1965_v25 = vpack.c.bf16 %v1125_v14, %v1123_v13  ;;  %v1132_v52 = vld [vmem:[#allocation8 + $0x110] sm:$0xff] }
  0xf6   :  { %803 = vmatprep.mubr.f32.mxu0 %v2307_v46  ;;  %945 = vmatprep.mubr.f32.mxu1 %v2424_v19  ;;  %v1825_v19 = vpack.c.bf16 %v275_v16, %v271_v55  ;;  %v1949_v40 = vpack.c.bf16 %v1109_v33, %v1107_v32  ;;  %v314_v48 = vld [vmem:[#allocation5 + $0x670] sm:$0xff]  ;;  %v1117_v16 = vld [vmem:[#allocation8 + $0x98] sm:$0xff] }
  0xf7   :  { %1938 = vmatprep.subr.bf16.mxu0 %v1937_v45  ;;  %v1113_v45 = vld [vmem:[#allocation8 + $0x78] sm:$0xff]  ;;  %v1115_v55 = vld [vmem:[#allocation8 + $0x88] sm:$0xff] }
  0xf8   :  { %1816 = vmatpush1.bf16.msra.mxu1 %v1815_v39  ;;  %v311_v39 = vld [vmem:[#allocation5 + $0x658] sm:$0xff]  ;;  %v1127_v30 = vld [vmem:[#allocation8 + $0xe8] sm:$0xff] }
  0xf9   :  { %1818 = vmatprep.subr.bf16.mxu1 %v1817_v41  ;;  %v1106_v41 = vld [vmem:[#allocation8 + $0x40] sm:$0xff]  ;;  %v343_v24 = vld [vmem:[#allocation5 + $0x758] sm:$0xff] }
  0xfa   :  { %v1951_v17 = vpack.c.bf16 %v1108_v42, %v1106_v41  ;;  %v347_v28 = vld [vmem:[#allocation5 + $0x778] sm:$0xff] }
  0xfb   :  { %v1129_v32 = vld [vmem:[#allocation8 + $0xf8] sm:$0xff]  ;;  %v1128_v41 = vld [vmem:[#allocation8 + $0xf0] sm:$0xff] }
  0xfc   :  { %1511 = vmatmul.mubr.msk.f32.vlgmr.msra.gmra.mrb[0].mxu0 %vm522_vm0, %v107_v50  ;;  %1820 = vmatpush1.bf16.msra.mxu1 %v1819_v49  ;;  %v1845_v49 = vpack.c.bf16 %v315_v43, %v311_v39  ;;  %v1969_v39 = vpack.c.bf16 %v1129_v32, %v1127_v30  ;;  %v355_v42 = vld [vmem:[#allocation5 + $0x7b8] sm:$0xff]  ;;  %v1131_v43 = vld [vmem:[#allocation8 + $0x108] sm:$0xff] }
  0xfd   :  { %1822 = vmatprep.subr.bf16.mxu1 %v1821_v51  ;;  %1940 = vmatpush1.bf16.msra.mxu0 %v1939_v54  ;;  %v1953_v51 = vpack.c.bf16 %v1113_v45, %v1111_v44  ;;  %v323_v54 = vld [vmem:[#allocation5 + $0x6b8] sm:$0xff] }
  0xfe   :  { %1087 = vmatprep.mubr.f32.mxu0 %v2307_v46  ;;  %1942 = vmatprep.subr.bf16.mxu0 %v1941_v22  ;;  %v1843_v46 = vpack.c.bf16 %v306_v36, %v302_v35  ;;  %v346_v35 = vld [vmem:[#allocation5 + $0x770] sm:$0xff]  ;;  %v1133_v44 = vld [vmem:[#allocation8 + $0x118] sm:$0xff] }
  0xff   :  { %v363_v53 = vld [vmem:[#allocation5 + $0x7f8] sm:$0xff] }
 0x100   :  { %1824 = vmatpush1.bf16.msra.mxu1 %v1823_v56  ;;  %1512 = vmatmul.mubr.msk.f32.vlgmr.msra.gmra.mrb[2].mxu0 %vm522_vm0, %v107_v50  ;;  %v319_v50 = vld [vmem:[#allocation5 + $0x698] sm:$0xff]  ;;  %v1847_v56 = vpack.c.bf16 %v314_v48, %v310_v47  ;;  %v354_v47 = vld [vmem:[#allocation5 + $0x7b0] sm:$0xff] }
 0x101   :  { %1826 = vmatprep.subr.bf16.mxu1 %v1825_v19  ;;  %1944 = vmatpush1.bf16.msra.mxu0 %v1943_v26  ;;  %v318_v19 = vld [vmem:[#allocation5 + $0x690] sm:$0xff]  ;;  %v1849_v59 = vpack.c.bf16 %v323_v54, %v319_v50  ;;  %v1122_v26 = vld [vmem:[#allocation8 + $0xc0] sm:$0xff]  ;;  %v1973_v50 = vpack.c.bf16 %v1133_v44, %v1131_v43  ;;  %v1141_v1 = vld [vmem:[#allocation8 + $0x158] sm:$0xff] }
 0x102   :  { %1946 = vmatprep.subr.bf16.mxu0 %v1945_v27  ;;  %v1124_v27 = vld [vmem:[#allocation8 + $0xd0] sm:$0xff]  ;;  %v1135_v54 = vld [vmem:[#allocation8 + $0x128] sm:$0xff]  ;;  %v1981_v8 = vpack.c.bf16 %v1141_v1, %v1139_v0  ;;  %v1145_v13 = vld [vmem:[#allocation8 + $0x178] sm:$0xff] }
 0x103   :  { %v1967_v36 = vpack.c.bf16 %v1124_v27, %v1122_v26  ;;  %v1142_v26 = vld [vmem:[#allocation8 + $0x160] sm:$0xff]  ;;  %v1144_v27 = vld [vmem:[#allocation8 + $0x170] sm:$0xff]  ;;  %v1149_v30 = vld [vmem:[#allocation8 + $0x198] sm:$0xff] }
 0x104   :  { %1828 = vmatpush1.bf16.msra.mxu1 %v1827_v61  ;;  %v1957_v61 = vpack.c.bf16 %v1117_v16, %v1115_v55  ;;  %v1137_v55 = vld [vmem:[#allocation8 + $0x138] sm:$0xff] }
 0x105   :  { %1830 = vmatprep.subr.bf16.mxu1 %v1829_v62  ;;  %1948 = vmatpush1.bf16.msra.mxu0 %v1947_v37  ;;  %v1114_v62 = vld [vmem:[#allocation8 + $0x80] sm:$0xff]  ;;  %v1861_v37 = vpack.c.bf16 %v347_v28, %v343_v24  ;;  %v1977_v60 = vpack.c.bf16 %v1137_v55, %v1135_v54  ;;  %v387_v24 = vld [vmem:[#allocation5 + $0x8b8] sm:$0xff]  ;;  %v1147_v28 = vld [vmem:[#allocation8 + $0x188] sm:$0xff] }
 0x106   :  { %1950 = vmatprep.subr.bf16.mxu0 %v1949_v40  ;;  %v1959_v6 = vpack.c.bf16 %v1116_v63, %v1114_v62  ;;  %v1126_v40 = vld [vmem:[#allocation8 + $0xe0] sm:$0xff]  ;;  %v1136_v62 = vld [vmem:[#allocation8 + $0x130] sm:$0xff] }
 0x107   :  { %v1971_v48 = vpack.c.bf16 %v1128_v41, %v1126_v40  ;;  %v371_v63 = vld [vmem:[#allocation5 + $0x838] sm:$0xff]  ;;  %v1146_v40 = vld [vmem:[#allocation8 + $0x180] sm:$0xff]  ;;  %v398_v55 = vld [vmem:[#allocation5 + $0x910] sm:$0xff] }
 0x108   :  { %1832 = vmatpush1.bf16.msra.mxu1 %v1831_v3  ;;  %v1851_v3 = vpack.c.bf16 %v322_v57, %v318_v19  ;;  %v362_v19 = vld [vmem:[#allocation5 + $0x7f0] sm:$0xff]  ;;  %v419_v0 = vld [vmem:[#allocation5 + $0x9b8] sm:$0xff] }
 0x109   :  { %1834 = vmatprep.subr.bf16.mxu1 %v1833_v4  ;;  %1952 = vmatpush1.bf16.msra.mxu0 %v1951_v17  ;;  %v326_v4 = vld [vmem:[#allocation5 + $0x6d0] sm:$0xff] }
 0x10a   :  { %1954 = vmatprep.subr.bf16.mxu0 %v1953_v51  ;;  %v1855_v15 = vpack.c.bf16 %v330_v5, %v326_v4  ;;  %v1130_v51 = vld [vmem:[#allocation8 + $0x100] sm:$0xff]  ;;  %v366_v5 = vld [vmem:[#allocation5 + $0x810] sm:$0xff] }
 0x10b   :  { %v1975_v57 = vpack.c.bf16 %v1132_v52, %v1130_v51  ;;  %v1148_v41 = vld [vmem:[#allocation8 + $0x190] sm:$0xff]  ;;  %v1155_v51 = vld [vmem:[#allocation8 + $0x1c8] sm:$0xff]  ;;  %v1157_v52 = vld [vmem:[#allocation8 + $0x1d8] sm:$0xff] }
 0x10c   :  { %1836 = vmatpush1.bf16.msra.mxu1 %v1835_v11  ;;  %v1120_v11 = vld [vmem:[#allocation8 + $0xb0] sm:$0xff] }
 0x10d   :  { %1838 = vmatprep.subr.bf16.mxu1 %v1837_v21  ;;  %1956 = vmatpush1.bf16.msra.mxu0 %v1955_v58  ;;  %v338_v21 = vld [vmem:[#allocation5 + $0x730] sm:$0xff]  ;;  %v1963_v22 = vpack.c.bf16 %v1120_v11, %v1118_v10  ;;  %v1138_v10 = vld [vmem:[#allocation8 + $0x140] sm:$0xff] }
 0x10e   :  { %1958 = vmatprep.subr.bf16.mxu0 %v1957_v61  ;;  %v1859_v33 = vpack.c.bf16 %v338_v21, %v334_v20  ;;  %v1134_v61 = vld [vmem:[#allocation8 + $0x120] sm:$0xff]  ;;  %v1140_v11 = vld [vmem:[#allocation8 + $0x150] sm:$0xff] }
 0x10f   :  { %v374_v20 = vld [vmem:[#allocation5 + $0x850] sm:$0xff] }
 0x110   :  { %1840 = vmatpush1.bf16.msra.mxu1 %v1839_v34  ;;  %v342_v34 = vld [vmem:[#allocation5 + $0x750] sm:$0xff] }
 0x111   :  { %1842 = vmatprep.subr.bf16.mxu1 %v1841_v38  ;;  %1960 = vmatpush1.bf16.msra.mxu0 %v1959_v6  ;;  %v351_v38 = vld [vmem:[#allocation5 + $0x798] sm:$0xff]  ;;  %v1863_v45 = vpack.c.bf16 %v346_v35, %v342_v34  ;;  %v370_v6 = vld [vmem:[#allocation5 + $0x830] sm:$0xff] }
 0x112   :  { %1962 = vmatprep.subr.bf16.mxu0 %v1961_v9  ;;  %v1865_v17 = vpack.c.bf16 %v355_v42, %v351_v38  ;;  %v379_v9 = vld [vmem:[#allocation5 + $0x878] sm:$0xff]  ;;  %v1875_v14 = vpack.c.bf16 %v370_v6, %v366_v5  ;;  %v378_v21 = vld [vmem:[#allocation5 + $0x870] sm:$0xff] }
 0x113   :  { %v1879_v32 = vpack.c.bf16 %v378_v21, %v374_v20  ;;  %v382_v34 = vld [vmem:[#allocation5 + $0x890] sm:$0xff]  ;;  %v395_v38 = vld [vmem:[#allocation5 + $0x8f8] sm:$0xff] }
 0x114   :  { %1844 = vmatpush1.bf16.msra.mxu1 %v1843_v46  ;;  %v350_v46 = vld [vmem:[#allocation5 + $0x790] sm:$0xff]  ;;  %v423_v5 = vld [vmem:[#allocation5 + $0x9d8] sm:$0xff] }
 0x115   :  { %1846 = vmatprep.subr.bf16.mxu1 %v1845_v49  ;;  %1964 = vmatpush1.bf16.msra.mxu0 %v1963_v22  ;;  %v359_v49 = vld [vmem:[#allocation5 + $0x7d8] sm:$0xff]  ;;  %v1867_v16 = vpack.c.bf16 %v354_v47, %v350_v46  ;;  %v386_v35 = vld [vmem:[#allocation5 + $0x8b0] sm:$0xff]  ;;  %v1991_v47 = vpack.c.bf16 %v1148_v41, %v1146_v40 }
 0x116   :  { %1966 = vmatprep.subr.bf16.mxu0 %v1965_v25  ;;  %v1869_v58 = vpack.c.bf16 %v363_v53, %v359_v49  ;;  %v383_v22 = vld [vmem:[#allocation5 + $0x898] sm:$0xff]  ;;  %v1985_v25 = vpack.c.bf16 %v1145_v13, %v1143_v12  ;;  %v1151_v42 = vld [vmem:[#allocation8 + $0x1a8] sm:$0xff]  ;;  %v1883_v43 = vpack.c.bf16 %v386_v35, %v382_v34  ;;  %v1150_v49 = vld [vmem:[#allocation8 + $0x1a0] sm:$0xff] }
 0x117   :  { %v399_v46 = vld [vmem:[#allocation5 + $0x918] sm:$0xff]  ;;  %v430_v21 = vld [vmem:[#allocation5 + $0xa10] sm:$0xff] }
 0x118   :  { %1848 = vmatpush1.bf16.msra.mxu1 %v1847_v56  ;;  %v358_v56 = vld [vmem:[#allocation5 + $0x7d0] sm:$0xff]  ;;  %v427_v6 = vld [vmem:[#allocation5 + $0x9f8] sm:$0xff] }
 0x119   :  { %1850 = vmatprep.subr.bf16.mxu1 %v1849_v59  ;;  %1968 = vmatpush1.bf16.msra.mxu0 %v1967_v36  ;;  %v367_v59 = vld [vmem:[#allocation5 + $0x818] sm:$0xff]  ;;  %v1871_v2 = vpack.c.bf16 %v362_v19, %v358_v56  ;;  %v438_v35 = vld [vmem:[#allocation5 + $0xa50] sm:$0xff] }
 0x11a   :  { %1970 = vmatprep.subr.bf16.mxu0 %v1969_v39  ;;  %v1873_v4 = vpack.c.bf16 %v371_v63, %v367_v59  ;;  %v391_v36 = vld [vmem:[#allocation5 + $0x8d8] sm:$0xff]  ;;  %v1989_v39 = vpack.c.bf16 %v1149_v30, %v1147_v28 }
 0x11b   :  { %v1885_v44 = vpack.c.bf16 %v395_v38, %v391_v36  ;;  %v407_v19 = vld [vmem:[#allocation5 + $0x958] sm:$0xff]  ;;  %v442_v36 = vld [vmem:[#allocation5 + $0xa70] sm:$0xff] }
 0x11c   :  { %1852 = vmatpush1.bf16.msra.mxu1 %v1851_v3  ;;  %v1979_v3 = vpack.c.bf16 %v1136_v62, %v1134_v61  ;;  %v406_v61 = vld [vmem:[#allocation5 + $0x950] sm:$0xff]  ;;  %v415_v63 = vld [vmem:[#allocation5 + $0x998] sm:$0xff]  ;;  %v1911_v40 = vpack.c.bf16 %v442_v36, %v438_v35 }
 0x11d   :  { %1854 = vmatprep.subr.bf16.mxu1 %v1853_v7  ;;  %1972 = vmatpush1.bf16.msra.mxu0 %v1971_v48  ;;  %v375_v7 = vld [vmem:[#allocation5 + $0x858] sm:$0xff]  ;;  %v410_v62 = vld [vmem:[#allocation5 + $0x970] sm:$0xff] }
 0x11e   :  { %1974 = vmatprep.subr.bf16.mxu0 %v1973_v50  ;;  %v403_v48 = vld [vmem:[#allocation5 + $0x938] sm:$0xff]  ;;  %v1895_v1 = vpack.c.bf16 %v410_v62, %v406_v61  ;;  %v1383_v36 = vld [vmem:[%s2586_s5 + $0x8] sm:$0xff] }
 0x11f   :  { %v1152_v50 = vld [vmem:[#allocation8 + $0x1b0] sm:$0xff]  ;;  %v1889_v54 = vpack.c.bf16 %v403_v48, %v399_v46 }
 0x120   :  { %1856 = vmatpush1.bf16.msra.mxu1 %v1855_v15  ;;  %v1877_v15 = vpack.c.bf16 %v379_v9, %v375_v7  ;;  %v1995_v56 = vpack.c.bf16 %v1152_v50, %v1150_v49  ;;  %v422_v9 = vld [vmem:[#allocation5 + $0x9d0] sm:$0xff]  ;;  %v435_v12 = vld [vmem:[#allocation5 + $0xa38] sm:$0xff] }
 0x121   :  { %1858 = vmatprep.subr.bf16.mxu1 %v1857_v23  ;;  %1976 = vmatpush1.bf16.msra.mxu0 %v1975_v57  ;;  %v1983_v23 = vpack.c.bf16 %v1140_v11, %v1138_v10  ;;  %v411_v57 = vld [vmem:[#allocation5 + $0x978] sm:$0xff]  ;;  %v426_v10 = vld [vmem:[#allocation5 + $0x9f0] sm:$0xff] }
 0x122   :  { %1978 = vmatprep.subr.bf16.mxu0 %v1977_v60  ;;  %v1893_v60 = vpack.c.bf16 %v411_v57, %v407_v19  ;;  %v431_v11 = vld [vmem:[#allocation5 + $0xa18] sm:$0xff]  ;;  %v1903_v13 = vpack.c.bf16 %v426_v10, %v422_v9  ;;  %v458_v49 = vld [vmem:[#allocation5 + $0xaf0] sm:$0xff] }
 0x123   :  { %v1905_v20 = vpack.c.bf16 %v435_v12, %v431_v11  ;;  %v447_v38 = vld [vmem:[#allocation5 + $0xa98] sm:$0xff]  ;;  %v502_v11 = vlaneseq }
 0x124   :  { %1860 = vmatpush1.bf16.msra.mxu1 %v1859_v33  ;;  %v1881_v33 = vpack.c.bf16 %v387_v24, %v383_v22  ;;  %v434_v22 = vld [vmem:[#allocation5 + $0xa30] sm:$0xff]  ;;  %v439_v24 = vld [vmem:[#allocation5 + $0xa58] sm:$0xff] }
 0x125   :  { %1862 = vmatprep.subr.bf16.mxu1 %v1861_v37  ;;  %1980 = vmatpush1.bf16.msra.mxu0 %v1979_v3  ;;  %v1987_v37 = vpack.c.bf16 %v1144_v27, %v1142_v26  ;;  %v414_v3 = vld [vmem:[#allocation5 + $0x990] sm:$0xff]  ;;  %v1161_v27 = vld [vmem:[#allocation8 + $0x1f8] sm:$0xff]  ;;  %v1907_v28 = vpack.c.bf16 %v434_v22, %v430_v21  ;;  %v2447_v12 = vshrl.u32 %v502_v11, 7  ;;  %v1162_v22 = vld [vmem:[#allocation8 + $0x200] sm:$0xff] }
 0x126   :  { %1982 = vmatprep.subr.bf16.mxu0 %v1981_v8  ;;  %v1901_v8 = vpack.c.bf16 %v427_v6, %v423_v5  ;;  %v1159_v26 = vld [vmem:[#allocation8 + $0x1e8] sm:$0xff]  ;;  %v463_v50 = vld [vmem:[#allocation5 + $0xb18] sm:$0xff] }
 0x127   :  { %v2001_v30 = vpack.c.bf16 %v1161_v27, %v1159_v26  ;;  %v483_v61 = vld [vmem:[#allocation5 + $0xbb8] sm:$0xff]  ;;  %v486_v6 = vld [vmem:[#allocation5 + $0xbd0] sm:$0xff] }
 0x128   :  { %1864 = vmatpush1.bf16.msra.mxu1 %v1863_v45  ;;  %v390_v45 = vld [vmem:[#allocation5 + $0x8d0] sm:$0xff]  ;;  %v1169_v27 = vld [vmem:[#allocation8 + $0x238] sm:$0xff] }
 0x129   :  { %1866 = vmatprep.subr.bf16.mxu1 %v1865_v17  ;;  %1984 = vmatpush1.bf16.msra.mxu0 %v1983_v23  ;;  %v1167_v26 = vld [vmem:[#allocation8 + $0x228] sm:$0xff] }
 0x12a   :  { %1986 = vmatprep.subr.bf16.mxu0 %v1985_v25  ;;  %v443_v25 = vld [vmem:[#allocation5 + $0xa78] sm:$0xff] }
 0x12b   :  { %v1909_v34 = vpack.c.bf16 %v443_v25, %v439_v24 }
 0x12c   :  { %1868 = vmatpush1.bf16.msra.mxu1 %v1867_v16  ;;  %v402_v16 = vld [vmem:[#allocation5 + $0x930] sm:$0xff] }
 0x12d   :  { %1870 = vmatprep.subr.bf16.mxu1 %v1869_v58  ;;  %1988 = vmatpush1.bf16.msra.mxu0 %v1987_v37  ;;  %v1997_v58 = vpack.c.bf16 %v1157_v52, %v1155_v51  ;;  %v1891_v59 = vpack.c.bf16 %v402_v16, %v398_v55  ;;  %v467_v51 = vld [vmem:[#allocation5 + $0xb38] sm:$0xff]  ;;  %v466_v55 = vld [vmem:[#allocation5 + $0xb30] sm:$0xff] }
 0x12e   :  { %1990 = vmatprep.subr.bf16.mxu0 %v1989_v39  ;;  %v451_v39 = vld [vmem:[#allocation5 + $0xab8] sm:$0xff] }
 0x12f   :  { %v1913_v41 = vpack.c.bf16 %v451_v39, %v447_v38  ;;  %v471_v16 = vld [vmem:[#allocation5 + $0xb58] sm:$0xff]  ;;  %v1401_v38 = vld [vmem:[%s2586_s5 + $0x98] sm:$0xff] }
 0x130   :  { %1872 = vmatpush1.bf16.msra.mxu1 %v1871_v2  ;;  %v1897_v2 = vpack.c.bf16 %v419_v0, %v415_v63  ;;  %v478_v0 = vld [vmem:[#allocation5 + $0xb90] sm:$0xff] }
 0x131   :  { %1874 = vmatprep.subr.bf16.mxu1 %v1873_v4  ;;  %1992 = vmatpush1.bf16.msra.mxu0 %v1991_v47  ;;  %v418_v4 = vld [vmem:[#allocation5 + $0x9b0] sm:$0xff] }
 0x132   :  { %v1899_v7 = vpack.c.bf16 %v418_v4, %v414_v3  ;;  %v491_v3 = vld [vmem:[#allocation5 + $0xbf8] sm:$0xff] }
 0x133   :  { %946 = vmatmul.mubr.f32.vlgmr.msra.gmra.mrb[2].mxu1 %v2429_v18  ;;  %v1153_v18 = vld [vmem:[#allocation8 + $0x1b8] sm:$0xff] }
 0x134   :  { %1876 = vmatpush1.bf16.msra.mxu1 %v1875_v14  ;;  %1016 = vmatprep.mubr.f32.mxu1 %v2434_v29  ;;  %v394_v29 = vld [vmem:[#allocation5 + $0x8f0] sm:$0xff]  ;;  %v1993_v17 = vpack.c.bf16 %v1153_v18, %v1151_v42  ;;  %v1154_v14 = vld [vmem:[#allocation8 + $0x1c0] sm:$0xff] }
 0x135   :  { %1878 = vmatprep.subr.bf16.mxu1 %v1877_v15  ;;  %v1887_v53 = vpack.c.bf16 %v394_v29, %v390_v45  ;;  %v1156_v15 = vld [vmem:[#allocation8 + $0x1d0] sm:$0xff]  ;;  %v1163_v45 = vld [vmem:[#allocation8 + $0x208] sm:$0xff]  ;;  %v1165_v29 = vld [vmem:[#allocation8 + $0x218] sm:$0xff] }
 0x136   :  { %1994 = vmatprep.subr.bf16.mxu0 %v1993_v17  ;;  %v1999_v23 = vpack.c.bf16 %v1156_v15, %v1154_v14  ;;  %v446_v42 = vld [vmem:[#allocation5 + $0xa90] sm:$0xff]  ;;  %v2005_v46 = vpack.c.bf16 %v1165_v29, %v1163_v45  ;;  %v2450_v14 = vld [vmem:[#allocation7] sm:$0xf]  ;;  %v508_v15 = vsub.s32 1, %v2447_v12 }
 0x137   :  { %1996 = vmatpush1.bf16.msra.mxu0 %v1995_v56  ;;  %v450_v18 = vld [vmem:[#allocation5 + $0xab0] sm:$0xff]  ;;  %v475_v56 = vld [vmem:[#allocation5 + $0xb78] sm:$0xff] }
 0x138   :  { %1880 = vmatpush1.bf16.msra.mxu1 %v1879_v32  ;;  %1998 = vmatprep.subr.bf16.mxu0 %v1997_v58  ;;  %v1158_v32 = vld [vmem:[#allocation8 + $0x1e0] sm:$0xff]  ;;  %v1915_v47 = vpack.c.bf16 %v450_v18, %v446_v42  ;;  %v454_v17 = vld [vmem:[#allocation5 + $0xad0] sm:$0xff]  ;;  %v1925_v57 = vpack.c.bf16 %v475_v56, %v471_v16  ;;  %v509_v21 = vrot.slane %v2450_v14, %v508_v15  ;;  %v1384_v42 = vld [vmem:[%s2586_s5 + $0x10] sm:$0xff] }
 0x139   :  { %1882 = vmatprep.subr.bf16.mxu1 %v1881_v33  ;;  %v1160_v33 = vld [vmem:[#allocation8 + $0x1f0] sm:$0xff]  ;;  %v1919_v52 = vpack.c.bf16 %v458_v49, %v454_v17  ;;  %v1385_v18 = vld [vmem:[%s2586_s5 + $0x18] sm:$0xff] }
 0x13a   :  { %v2003_v37 = vpack.c.bf16 %v1160_v33, %v1158_v32  ;;  %v470_v58 = vld [vmem:[#allocation5 + $0xb50] sm:$0xff]  ;;  %v1382_v32 = vld [vmem:[%s2586_s5] sm:$0xff]  ;;  %v2075_v17 = vpack.c.bf16 %v1385_v18, %v1384_v42  ;;  %v1173_v16 = vld [vmem:[#allocation8 + $0x258] sm:$0xff] }
 0x13b   :  { %2000 = vmatpush1.bf16.msra.mxu0 %v1999_v23  ;;  %v1164_v23 = vld [vmem:[#allocation8 + $0x210] sm:$0xff] }
 0x13c   :  { %1884 = vmatpush1.bf16.msra.mxu1 %v1883_v43  ;;  %2002 = vmatprep.subr.bf16.mxu0 %v2001_v30  ;;  %v455_v43 = vld [vmem:[#allocation5 + $0xad8] sm:$0xff]  ;;  %v1399_v30 = vld [vmem:[%s2586_s5 + $0x88] sm:$0xff]  ;;  %v2007_v29 = vpack.c.bf16 %v1164_v23, %v1162_v22  ;;  %v1409_v23 = vld [vmem:[%s2586_s5 + $0xd8] sm:$0xff] }
 0x13d   :  { %1886 = vmatprep.subr.bf16.mxu1 %v1885_v44  ;;  %v459_v44 = vld [vmem:[#allocation5 + $0xaf8] sm:$0xff] }
 0x13e   :  { %v1917_v48 = vpack.c.bf16 %v459_v44, %v455_v43  ;;  %v1402_v43 = vld [vmem:[%s2586_s5 + $0xa0] sm:$0xff]  ;;  %v1403_v44 = vld [vmem:[%s2586_s5 + $0xa8] sm:$0xff]  ;;  %v1404_v56 = vld [vmem:[%s2586_s5 + $0xb0] sm:$0xff] }
 0x13f   :  { %2004 = vmatpush1.bf16.msra.mxu0 %v2003_v37  ;;  %v1400_v37 = vld [vmem:[%s2586_s5 + $0x90] sm:$0xff] }
 0x140   :  { %1888 = vmatpush1.bf16.msra.mxu1 %v1887_v53  ;;  %2006 = vmatprep.subr.bf16.mxu0 %v2005_v46  ;;  %v1921_v53 = vpack.c.bf16 %v467_v51, %v463_v50  ;;  %v1166_v46 = vld [vmem:[#allocation8 + $0x220] sm:$0xff]  ;;  %v2009_v50 = vpack.c.bf16 %v1169_v27, %v1167_v26  ;;  %v1171_v51 = vld [vmem:[#allocation8 + $0x248] sm:$0xff]  ;;  %v1408_v22 = vld [vmem:[%s2586_s5 + $0xd0] sm:$0xff] }
 0x141   :  { %1890 = vmatprep.subr.bf16.mxu1 %v1889_v54  ;;  %v462_v54 = vld [vmem:[#allocation5 + $0xb10] sm:$0xff] }
 0x142   :  { %v1923_v19 = vpack.c.bf16 %v466_v55, %v462_v54  ;;  %v1386_v54 = vld [vmem:[%s2586_s5 + $0x20] sm:$0xff]  ;;  %v1387_v55 = vld [vmem:[%s2586_s5 + $0x28] sm:$0xff] }
 0x143   :  { %v1180_v26 = vld [vmem:[#allocation8 + $0x290] sm:$0xff] }
 0x144   :  { %1892 = vmatpush1.bf16.msra.mxu1 %v1891_v59  ;;  %v474_v59 = vld [vmem:[#allocation5 + $0xb70] sm:$0xff] }
 0x145   :  { %1894 = vmatprep.subr.bf16.mxu1 %v1893_v60  ;;  %v479_v60 = vld [vmem:[#allocation5 + $0xb98] sm:$0xff]  ;;  %v1927_v62 = vpack.c.bf16 %v474_v59, %v470_v58  ;;  %v1170_v58 = vld [vmem:[#allocation8 + $0x240] sm:$0xff] }
 0x146   :  { %v1929_v63 = vpack.c.bf16 %v483_v61, %v479_v60  ;;  %v1172_v59 = vld [vmem:[#allocation8 + $0x250] sm:$0xff]  ;;  %v2079_v60 = vpack.c.bf16 %v1387_v55, %v1386_v54  ;;  %v2013_v61 = vpack.c.bf16 %v1173_v16, %v1171_v51  ;;  %v1195_v55 = vld [vmem:[#allocation8 + $0x308] sm:$0xff]  ;;  %v1197_v16 = vld [vmem:[#allocation8 + $0x318] sm:$0xff] }
 0x147   :  { %v1184_v42 = vld [vmem:[#allocation8 + $0x2b0] sm:$0xff] }
 0x148   :  { %1896 = vmatpush1.bf16.msra.mxu1 %v1895_v1  ;;  %v482_v1 = vld [vmem:[#allocation5 + $0xbb0] sm:$0xff] }
 0x149   :  { %1898 = vmatprep.subr.bf16.mxu1 %v1897_v2  ;;  %v487_v2 = vld [vmem:[#allocation5 + $0xbd8] sm:$0xff]  ;;  %v1931_v4 = vpack.c.bf16 %v482_v1, %v478_v0  ;;  %v1389_v1 = vld [vmem:[%s2586_s5 + $0x38] sm:$0xff] }
 0x14a   :  { %v1933_v5 = vpack.c.bf16 %v491_v3, %v487_v2  ;;  %v1388_v0 = vld [vmem:[%s2586_s5 + $0x30] sm:$0xff]  ;;  %v1406_v3 = vld [vmem:[%s2586_s5 + $0xc0] sm:$0xff] }
 0x14b   :  { %v1177_v2 = vld [vmem:[#allocation8 + $0x278] sm:$0xff]  ;;  %v1192_v54 = vld [vmem:[#allocation8 + $0x2f0] sm:$0xff] }
 0x14c   :  { %1900 = vmatpush1.bf16.msra.mxu1 %v1899_v7  ;;  %v490_v7 = vld [vmem:[#allocation5 + $0xbf0] sm:$0xff] }
 0x14d   :  { %1902 = vmatprep.subr.bf16.mxu1 %v1901_v8  ;;  %v1935_v8 = vpack.c.bf16 %v490_v7, %v486_v6  ;;  %v1174_v6 = vld [vmem:[#allocation8 + $0x260] sm:$0xff]  ;;  %v1176_v7 = vld [vmem:[#allocation8 + $0x270] sm:$0xff] }
 0x150   :  { %1904 = vmatpush1.bf16.msra.mxu1 %v1903_v13  ;;  %v504_v13 = vsub.s32 0, %v2447_v12 }
 0x151   :  { %1906 = vmatprep.subr.bf16.mxu1 %v1905_v20 }
 0x152   :  { %v505_v20 = vrot.slane %v2450_v14, %v504_v13 }
 0x154   :  { %1908 = vmatpush1.bf16.msra.mxu1 %v1907_v28  ;;  %v1398_v28 = vld [vmem:[%s2586_s5 + $0x80] sm:$0xff] }
 0x155   :  { %1910 = vmatprep.subr.bf16.mxu1 %v1909_v34  ;;  %v2069_v35 = vpack.c.bf16 %v1399_v30, %v1398_v28  ;;  %v1183_v30 = vld [vmem:[#allocation8 + $0x2a8] sm:$0xff] }
 0x158   :  { %1912 = vmatpush1.bf16.msra.mxu1 %v1911_v40  ;;  %v2071_v40 = vpack.c.bf16 %v1383_v36, %v1382_v32  ;;  %v2089_v32 = vpack.c.bf16 %v1409_v23, %v1408_v22  ;;  %v1410_v36 = vld [vmem:[%s2586_s5 + $0xe0] sm:$0xff] }
 0x159   :  { %1914 = vmatprep.subr.bf16.mxu1 %v1913_v41  ;;  %v2073_v41 = vpack.c.bf16 %v1401_v38, %v1400_v37  ;;  %v1411_v37 = vld [vmem:[%s2586_s5 + $0xe8] sm:$0xff] }
 0x15a   :  { %v2093_v18 = vpack.c.bf16 %v1411_v37, %v1410_v36 }
 0x15c   :  { %1916 = vmatpush1.bf16.msra.mxu1 %v1915_v47  ;;  %v1168_v47 = vld [vmem:[#allocation8 + $0x230] sm:$0xff] }
 0x15d   :  { %1918 = vmatprep.subr.bf16.mxu1 %v1917_v48 }
 0x160   :  { %1920 = vmatpush1.bf16.msra.mxu1 %v1919_v52 }
 0x161   :  { %1922 = vmatprep.subr.bf16.mxu1 %v1921_v53  ;;  %v2077_v53 = vpack.c.bf16 %v1403_v44, %v1402_v43  ;;  %v1187_v43 = vld [vmem:[#allocation8 + $0x2c8] sm:$0xff]  ;;  %v1189_v44 = vld [vmem:[#allocation8 + $0x2d8] sm:$0xff] }
 0x164   :  { %1924 = vmatpush1.bf16.msra.mxu1 %v1923_v19  ;;  %v1405_v19 = vld [vmem:[%s2586_s5 + $0xb8] sm:$0xff] }
 0x165   :  { %1926 = vmatprep.subr.bf16.mxu1 %v1925_v57  ;;  %v2011_v57 = vpack.c.bf16 %v1168_v47, %v1166_v46  ;;  %v1186_v46 = vld [vmem:[#allocation8 + $0x2c0] sm:$0xff]  ;;  %v1188_v47 = vld [vmem:[#allocation8 + $0x2d0] sm:$0xff] }
 0x168   :  { %1928 = vmatpush1.bf16.msra.mxu1 %v1927_v62  ;;  %v1175_v62 = vld [vmem:[#allocation8 + $0x268] sm:$0xff] }
 0x169   :  { %1930 = vmatprep.subr.bf16.mxu1 %v1929_v63  ;;  %v2081_v63 = vpack.c.bf16 %v1405_v19, %v1404_v56  ;;  %v2037_v19 = vpack.c.bf16 %v1197_v16, %v1195_v55 }
 0x16c   :  { %1932 = vmatpush1.bf16.msra.mxu1 %v1931_v4  ;;  %v1407_v4 = vld [vmem:[%s2586_s5 + $0xc8] sm:$0xff] }
 0x16d   :  { %1934 = vmatprep.subr.bf16.mxu1 %v1933_v5  ;;  %v2015_v5 = vpack.c.bf16 %v1172_v59, %v1170_v58  ;;  %v2085_v11 = vpack.c.bf16 %v1407_v4, %v1406_v3  ;;  %v1196_v58 = vld [vmem:[#allocation8 + $0x310] sm:$0xff]  ;;  %v1199_v59 = vld [vmem:[#allocation8 + $0x328] sm:$0xff] }
 0x170   :  { %1936 = vmatpush1.bf16.msra.mxu1 %v1935_v8  ;;  %v2083_v8 = vpack.c.bf16 %v1389_v1, %v1388_v0  ;;  %v1200_v0 = vld [vmem:[#allocation8 + $0x330] sm:$0xff]  ;;  %v1203_v1 = vld [vmem:[#allocation8 + $0x348] sm:$0xff] }
 0x171   :  { %2070 = vmatprep.subr.bf16.mxu1 %v2069_v35  ;;  %v1185_v35 = vld [vmem:[#allocation8 + $0x2b8] sm:$0xff] }
 0x173   :  { %1017 = vmatmul.mubr.f32.vlgmr.msra.gmra.mrb[2].mxu1 %v2437_v31 }
 0x174   :  { %2072 = vmatpush3.bf16.msra.mxu1 %v2071_v40  ;;  %v2025_v40 = vpack.c.bf16 %v1185_v35, %v1183_v30  ;;  %v1221_v35 = vld [vmem:[#allocation8 + $0x3d8] sm:$0xff] }
 0x175   :  { %2074 = vmatprep.subr.bf16.mxu1 %v2073_v41  ;;  %v1182_v41 = vld [vmem:[#allocation8 + $0x2a0] sm:$0xff] }
 0x178   :  { %2076 = vmatpush3.bf16.msra.mxu1 %v2075_v17  ;;  %v1191_v17 = vld [vmem:[#allocation8 + $0x2e8] sm:$0xff] }
 0x179   :  { %2078 = vmatprep.subr.bf16.mxu1 %v2077_v53  ;;  %v1190_v53 = vld [vmem:[#allocation8 + $0x2e0] sm:$0xff] }
 0x17a   :  { %v2035_v56 = vpack.c.bf16 %v1192_v54, %v1190_v53 }
 0x17c   :  { %2080 = vmatpush3.bf16.msra.mxu1 %v2079_v60  ;;  %v1201_v60 = vld [vmem:[#allocation8 + $0x338] sm:$0xff] }
 0x17d   :  { %2082 = vmatprep.subr.bf16.mxu1 %v2081_v63  ;;  %v1198_v63 = vld [vmem:[#allocation8 + $0x320] sm:$0xff] }
 0x17e   :  { %v2043_v3 = vpack.c.bf16 %v1200_v0, %v1198_v63 }
 0x180   :  { %2084 = vmatpush3.bf16.msra.mxu1 %v2083_v8  ;;  %v1209_v8 = vld [vmem:[#allocation8 + $0x378] sm:$0xff] }
 0x181   :  { %2086 = vmatprep.subr.bf16.mxu1 %v2085_v11  ;;  %v1206_v11 = vld [vmem:[#allocation8 + $0x360] sm:$0xff] }
 0x186   :  { %v592_v9 = vpop.f32.mrb[0].mxu1 }
 0x187   :  { %v594_v10 = vpop.f32.mrb[1].mxu1  ;;  %v593_v31 = vadd.f32 %v592_v9, %v505_v20  ;;  %v2017_v9 = vpack.c.bf16 %v1177_v2, %v1175_v62  ;;  %v1390_v20 = vld [vmem:[%s2586_s5 + $0x40] sm:$0xff]  ;;  %v2041_v62 = vpack.c.bf16 %v1201_v60, %v1199_v59  ;;  %v1205_v2 = vld [vmem:[#allocation8 + $0x358] sm:$0xff] }
 0x188   :  { %v595_v24 = vadd.f32 %v594_v10, %v509_v21  ;;  %v1179_v10 = vld [vmem:[#allocation8 + $0x288] sm:$0xff]  ;;  %v2045_v4 = vpack.c.bf16 %v1205_v2, %v1203_v1  ;;  %v1396_v59 = vld [vmem:[%s2586_s5 + $0x70] sm:$0xff]  ;;  %v1397_v60 = vld [vmem:[%s2586_s5 + $0x78] sm:$0xff] }
 0x189   :  { %v1391_v21 = vld [vmem:[%s2586_s5 + $0x48] sm:$0xff] }
 0x18a   :  { %v2087_v27 = vpack.c.bf16 %v1391_v21, %v1390_v20  ;;  %v1208_v20 = vld [vmem:[#allocation8 + $0x370] sm:$0xff]  ;;  %v1211_v21 = vld [vmem:[#allocation8 + $0x388] sm:$0xff] }
 0x18b   :  { %v2051_v22 = vpack.c.bf16 %v1208_v20, %v1206_v11 }
 0x18c   :  { %2088 = vmatpush3.bf16.msra.mxu1 %v2087_v27  ;;  %v1217_v27 = vld [vmem:[#allocation8 + $0x3b8] sm:$0xff] }
 0x18d   :  { %2090 = vmatprep.subr.bf16.mxu1 %v2089_v32  ;;  %v1214_v32 = vld [vmem:[#allocation8 + $0x3a0] sm:$0xff] }
 0x1cf   :  { %v805_v25 = vpop.f32.mrb[0].mxu0 }
 0x1d0   :  { %v2102_v33 = vadd.f32 %v805_v25, %v593_v31  ;;  %v807_v34 = vpop.f32.mrb[1].mxu0  ;;  %v1181_v31 = vld [vmem:[#allocation8 + $0x298] sm:$0xff]  ;;  %v1178_v25 = vld [vmem:[#allocation8 + $0x280] sm:$0xff] }
 0x1d1   :  { %v2104_v39 = vadd.f32 %v807_v34, %v595_v24  ;;  %v2019_v24 = vpack.c.bf16 %v1176_v7, %v1174_v6  ;;  %v2021_v28 = vpack.c.bf16 %v1181_v31, %v1179_v10  ;;  %v1393_v34 = vld [vmem:[%s2586_s5 + $0x58] sm:$0xff]  ;;  %v2023_v38 = vpack.c.bf16 %v1180_v26, %v1178_v25  ;;  %v1204_v6 = vld [vmem:[#allocation8 + $0x350] sm:$0xff]  ;;  %v1207_v7 = vld [vmem:[#allocation8 + $0x368] sm:$0xff] }
 0x1d2   :  { %v1094_v49 = vmax.f32 %v2102_v33, 0.0  ;;  %v1392_v33 = vld [vmem:[%s2586_s5 + $0x50] sm:$0xff]  ;;  %v2049_v10 = vpack.c.bf16 %v1209_v8, %v1207_v7  ;;  %v1215_v26 = vld [vmem:[#allocation8 + $0x3a8] sm:$0xff]  ;;  %v1513_v8 = vld [vmem:[#allocation11] ss:$0 sm:$0xff] }
 0x1d3   :  { %v1095_v45 = vmax.f32 %v2104_v39, 0.0  ;;  %v2489_v48 = vpop.f32.mrb[2].mxu0  ;;  %v2091_v39 = vpack.c.bf16 %v1393_v34, %v1392_v33  ;;  %v1213_v31 = vld [vmem:[#allocation8 + $0x398] sm:$0xff]  ;;  %v1212_v25 = vld [vmem:[#allocation8 + $0x390] sm:$0xff]  ;;  %v2057_v30 = vpack.c.bf16 %v1217_v27, %v1215_v26  ;;  %v1219_v34 = vld [vmem:[#allocation8 + $0x3c8] sm:$0xff] }
 0x1d4   :  { %v2491_v52 = vpop.f32.mrb[3].mxu0  ;;  %v2053_v23 = vpack.c.bf16 %v1213_v31, %v1211_v21  ;;  %v1216_v33 = vld [vmem:[#allocation8 + $0x3b0] sm:$0xff]  ;;  %v2061_v37 = vpack.c.bf16 %v1221_v35, %v1219_v34 }
 0x1d5   :  { %1302 = vmatprep.mubr.f32.mxu0 %v1095_v45  ;;  %v2027_v45 = vpack.c.bf16 %v1184_v42, %v1182_v41  ;;  %2092 = vmatpush3.bf16.msra.mxu1 %v2091_v39  ;;  %v2059_v36 = vpack.c.bf16 %v1216_v33, %v1214_v32  ;;  %v1220_v39 = vld [vmem:[#allocation8 + $0x3d0] sm:$0xff]  ;;  %v1225_v41 = vld [vmem:[#allocation8 + $0x3f8] sm:$0xff] }
 0x1d6   :  { %1303 = vmatmul.mubr.f32.vlgmr.msra.gmra.mrb[4].mxu0 %v1094_v49  ;;  %2094 = vmatprep.subr.bf16.mxu1 %v2093_v18  ;;  %v1193_v49 = vld [vmem:[#allocation8 + $0x2f8] sm:$0xff] }
 0x1d7   :  { %2008 = vmatpush1.bf16.msra.mxu0 %v2007_v29  ;;  %v2029_v29 = vpack.c.bf16 %v1189_v44, %v1187_v43  ;;  %v2033_v51 = vpack.c.bf16 %v1193_v49, %v1191_v17  ;;  %v1222_v43 = vld [vmem:[#allocation8 + $0x3e0] sm:$0xff]  ;;  %v1224_v44 = vld [vmem:[#allocation8 + $0x3f0] sm:$0xff] }
 0x1d8   :  { %2010 = vmatprep.subr.bf16.mxu0 %v2009_v50  ;;  %v2031_v50 = vpack.c.bf16 %v1188_v47, %v1186_v46  ;;  %v516_v46 = vsub.s32 3, %v2447_v12 }
 0x1da   :  { %v517_v17 = vrot.slane %v2450_v14, %v516_v46 }
 0x1db   :  { %2012 = vmatpush1.bf16.msra.mxu0 %v2011_v57  ;;  %v1194_v57 = vld [vmem:[#allocation8 + $0x300] sm:$0xff] }
 0x1dc   :  { %2014 = vmatprep.subr.bf16.mxu0 %v2013_v61  ;;  %v2039_v61 = vpack.c.bf16 %v1196_v58, %v1194_v57 }
 0x1df   :  { %2016 = vmatpush1.bf16.msra.mxu0 %v2015_v5  ;;  %v1202_v5 = vld [vmem:[#allocation8 + $0x340] sm:$0xff] }
 0x1e0   :  { %2018 = vmatprep.subr.bf16.mxu0 %v2017_v9  ;;  %v2047_v9 = vpack.c.bf16 %v1204_v6, %v1202_v5 }
 0x1e3   :  { %2020 = vmatpush1.bf16.msra.mxu0 %v2019_v24  ;;  %v1210_v24 = vld [vmem:[#allocation8 + $0x380] sm:$0xff] }
 0x1e4   :  { %2022 = vmatprep.subr.bf16.mxu0 %v2021_v28  ;;  %v2055_v28 = vpack.c.bf16 %v1212_v25, %v1210_v24 }
 0x1e7   :  { %2024 = vmatpush1.bf16.msra.mxu0 %v2023_v38  ;;  %v1218_v38 = vld [vmem:[#allocation8 + $0x3c0] sm:$0xff] }
 0x1e8   :  { %2026 = vmatprep.subr.bf16.mxu0 %v2025_v40  ;;  %v1223_v40 = vld [vmem:[#allocation8 + $0x3e8] sm:$0xff]  ;;  %v2063_v42 = vpack.c.bf16 %v1220_v39, %v1218_v38 }
 0x1e9   :  { %v2065_v18 = vpack.c.bf16 %v1225_v41, %v1223_v40 }
 0x1eb   :  { %2028 = vmatpush1.bf16.msra.mxu0 %v2027_v45  ;;  %v2067_v45 = vpack.c.bf16 %v1224_v44, %v1222_v43 }
 0x1ec   :  { %2030 = vmatprep.subr.bf16.mxu0 %v2029_v29  ;;  %v512_v29 = vsub.s32 2, %v2447_v12 }
 0x1ee   :  { %v513_v47 = vrot.slane %v2450_v14, %v512_v29  ;;  %v1395_v14 = vld [vmem:[%s2586_s5 + $0x68] sm:$0xff] }
 0x1ef   :  { %2032 = vmatpush1.bf16.msra.mxu0 %v2031_v50 }
 0x1f0   :  { %2034 = vmatprep.subr.bf16.mxu0 %v2033_v51 }
 0x1f3   :  { %2036 = vmatpush1.bf16.msra.mxu0 %v2035_v56 }
 0x1f4   :  { %2038 = vmatprep.subr.bf16.mxu0 %v2037_v19  ;;  %v1394_v19 = vld [vmem:[%s2586_s5 + $0x60] sm:$0xff] }
 0x1f5   :  { %v2095_v57 = vpack.c.bf16 %v1395_v14, %v1394_v19 }
 0x1f7   :  { %2040 = vmatpush1.bf16.msra.mxu0 %v2039_v61  ;;  %2096 = vmatpush3.bf16.msra.mxu1 %v2095_v57  ;;  %v2099_v61 = vpack.c.bf16 %v1397_v60, %v1396_v59 }
 0x1f8   :  { %2042 = vmatprep.subr.bf16.mxu0 %v2041_v62  ;;  %v1226_v62 = vld [vmem:[#allocation10] sm:$0x3] }
 0x1f9   :  { %v1231_v63 = vrot.slane %v1226_v62, %v504_v13  ;;  %v1235_v0 = vrot.slane %v1226_v62, %v508_v15 }
 0x1fb   :  { %2044 = vmatpush1.bf16.msra.mxu0 %v2043_v3 }
 0x1fc   :  { %2046 = vmatprep.subr.bf16.mxu0 %v2045_v4 }
 0x1ff   :  { %2048 = vmatpush1.bf16.msra.mxu0 %v2047_v9 }
 0x200   :  { %2050 = vmatprep.subr.bf16.mxu0 %v2049_v10 }
 0x203   :  { %2052 = vmatpush1.bf16.msra.mxu0 %v2051_v22 }
 0x204   :  { %2054 = vmatprep.subr.bf16.mxu0 %v2053_v23 }
 0x207   :  { %2056 = vmatpush1.bf16.msra.mxu0 %v2055_v28 }
 0x208   :  { %2058 = vmatprep.subr.bf16.mxu0 %v2057_v30 }
 0x20b   :  { %2060 = vmatpush1.bf16.msra.mxu0 %v2059_v36 }
 0x20c   :  { %2062 = vmatprep.subr.bf16.mxu0 %v2061_v37 }
 0x20f   :  { %2064 = vmatpush1.bf16.msra.mxu0 %v2063_v42 }
 0x210   :  { %2066 = vmatprep.subr.bf16.mxu0 %v2065_v18 }
 0x213   :  { %2068 = vmatpush1.bf16.msra.mxu0 %v2067_v45 }
 0x246   :  { %v1018_v49 = vpop.f32.mrb[2].mxu1 }
 0x247   :  { %v2105_v50 = vadd.f32 %v1018_v49, %v513_v47  ;;  %v1020_v51 = vpop.f32.mrb[3].mxu1 }
 0x248   :  { %v2107_v53 = vadd.f32 %v1020_v51, %v517_v17 }
 0x249   :  { %v2106_v54 = vadd.f32 %v2105_v50, %v2489_v48  ;;  %v1412_v48 = vld [vmem:[%s2586_s5 + $0xf0] sm:$0xff] }
 0x24a   :  { %v2108_v55 = vadd.f32 %v2107_v53, %v2491_v52  ;;  %v1413_v52 = vld [vmem:[%s2586_s5 + $0xf8] sm:$0xff]  ;;  %s2308_s5 = smov [#allocation13]  }
 0x24b   :  { %v1096_v56 = vmax.f32 %v2106_v54, 0.0  ;;  %v2097_v58 = vpack.c.bf16 %v1413_v52, %v1412_v48  ;;  %s1499_s28 = sshll.u32 %s2308_s5, 4  ;;  %s1500_s28 = int_to_ptr.vmem [resolvable:$true] %s1499_s28 }
 0x24c   :  { %v1097_v16 = vmax.f32 %v2108_v55, 0.0  ;;  %s2265_s29 = scalar_lea.vmem %s1500_s28, 128  ;;  %p2270_p7 = scmp.lt.s32.totalorder %s1500_s28, %s1500_s28 }
 0x24d   :  { %2098 = vmatprep.subr.bf16.mxu1 %v2097_v58  ;;  %p2266_p6 = scmp.ne.s32.totalorder %s1500_s28, %s2265_s29  ;;  %p2271_p8 = scmp.lt.s32.totalorder %s2265_s29, %s2265_s29 }
 0x24e   :  { %1373 = vmatprep.mubr.f32.mxu0 %v1097_v16  ;;  %2100 = vmatpush3.bf16.msra.mxu1 %v2099_v61 }
 0x24f   :  { %1374 = vmatmul.mubr.f32.vlgmr.msra.gmra.mrb[4].mxu0 %v1096_v56  ;;  %p2272_p9 = por %p2271_p8, %p2270_p7 }
 0x251   :  { %p2273_p10 = pnand %p2272_p9, %p2266_p6 }
 0x322   :  { %v1375_v1 = vpop.f32.mrb[4].mxu0 }
 0x323   :  { %v2109_v2 = vadd.f32 %v1375_v1, %v1231_v63  ;;  %v1377_v3 = vpop.f32.mrb[5].mxu0 }
 0x324   :  { %v2110_v4 = vadd.f32 %v1377_v3, %v1235_v0 }
 0x325   :  { %v1380_v6 = vmax.f32 %v2109_v2, 0.0 }
 0x326   :  { %v1381_v5 = vmax.f32 %v2110_v4, 0.0 }
 0x328   :  { %1485 = vmatprep.mubr.f32.mxu1 %v1381_v5 }
 0x329   :  { %1486 = vmatmul.mubr.f32.vlgmr.msra.gmra.mrb[4].mxu1 %v1380_v6 }
 0x3fc   :  { %v1546_v7 = vpop.f32.mrb[4].mxu1 }
 0x3fd   :  { %v1547_v9 = vpop.f32.mrb[5].mxu1 }
 0x3fe   :  { %v1548_v10 = vadd.f32 %v1547_v9, %v1546_v7 }
 0x400   :  { %v1488_v11 = vadd.f32 %v1548_v10, %v1513_v8 }
 0x402   :  { %1492 = vst.msk [vmem:[#allocation13] sm:$0xff] %vm1491_vm1, %v1488_v11 }
 0x403   :  { %2276 = shalt.err (!%p2273_p10)
}
 0x404   :  { %s2277_s10 = scalar_lea.hbm %s2588_s7, 128 }
 0x405   :  { %p2278_p11 = scmp.ne.s32.totalorder %s2588_s7, %s2277_s10  ;;  %p2281_p12 = scmp.lt.u32.totalorder %s2277_s10, %s2588_s7 }
 0x407   :  { %p2283_p13 = pnand %p2281_p12, %p2278_p11 }
 0x409   :  { %2286 = shalt.err (!%p2283_p13)
}
 0x40a   :  { %1502 = dma.vmem_to_hbm [thread:$0]  %s1500_s28, 128, %s2588_s7, [#allocation4]  }
 0x40b   :  { %2295 = dma.done.wait [#allocation4], 128  }
 0x40c   :  { %2296 = vsyncadd [#allocation4], 4294967168 }
 0x40d   :  { %1506 = vsyncpa [#allocation3], 1 }
 0x40e   :  { %1507 = vsyncpa [#allocation6], 1 }
 0x40f   :  { %1508 = vsyncpa [#allocation9], 1 }
 0x410   :  { %1509 = vsyncpa [#allocation12], 1 }
 0x411   :  { %1510 = vsyncpa [#allocation4], 1 }

</bundles_post_ra>
